<compile_context>
chip_gen: v5e
topology: v5e:2x2
jax: 0.10.0
libtpu: 0.0.40
codegen_flags: <defaults>
</compile_context>

<pallas_src>
import math
from functools import partial

import jax
import jax.numpy as jnp
from jax import lax
from jax.experimental import pallas as pl
from jax.experimental.pallas import tpu as pltpu


def mha_kernel(x_ref, wq_ref, wk_ref, wv_ref, bq_ref, bk_ref, bv_ref, o_ref,
               *, num_heads: int):
    # x_ref : (1, L, H)  bf16   current batch element
    # w*_ref: (H, H)     bf16   fused projection weights (resident across the grid)
    # b*_ref: (1, H)     f32
    # o_ref : (1, L, H)  f32    lane-dense output (heads concatenated on last axis)
    x = x_ref[0]                                                        # (L, H) bf16
    H = x.shape[-1]
    d_k = H // num_heads
    scale = jnp.float32(1.0 / math.sqrt(d_k))

    # Fused projections at full H width — bf16 operands, f32 accumulation.
    q = jnp.dot(x, wq_ref[...], preferred_element_type=jnp.float32) + bq_ref[...]
    k = jnp.dot(x, wk_ref[...], preferred_element_type=jnp.float32) + bk_ref[...]
    v = jnp.dot(x, wv_ref[...], preferred_element_type=jnp.float32) + bv_ref[...]

    # Pre-scale q once over (L, H) instead of dividing every (L, L) score block.
    q_bf = (q * scale).astype(jnp.bfloat16)
    k_bf = k.astype(jnp.bfloat16)
    v_bf = v.astype(jnp.bfloat16)

    outs = []
    for h in range(num_heads):                       # static, fully unrolled
        sl = slice(h * d_k, (h + 1) * d_k)
        qh, kh, vh = q_bf[:, sl], k_bf[:, sl], v_bf[:, sl]

        # QK^T without materializing k.T: contract last dims of both operands.
        scores = lax.dot_general(qh, kh, (((1,), (1,)), ((), ())),
                                 preferred_element_type=jnp.float32)    # (L, L) f32

        # Numerically stable softmax, f32 throughout (v5e has no bf16 VPU/EUP).
        m = jnp.max(scores, axis=-1, keepdims=True)
        p = jnp.exp(scores - m)
        denom = jnp.sum(p, axis=-1, keepdims=True)
        attn = p * pl.reciprocal(denom, approx=True)                    # (L, L) f32

        outs.append(jnp.dot(attn.astype(jnp.bfloat16), vh,
                            preferred_element_type=jnp.float32))        # (L, d_k) f32

    # Single lane-dense (L, H) store instead of num_heads masked (L, d_k) stores.
    o_ref[0] = jnp.concatenate(outs, axis=-1).astype(o_ref.dtype)


def multi_head_attention(x, W_q, W_k, W_v, b_q, b_k, b_v, num_heads):
    """x: (B, L, H); W_*: (H, H) acting as x @ W; b_*: (H,).  Returns (B, nh, L, d_k)."""
    B, L, H = x.shape
    assert H % num_heads == 0
    d_k = H // num_heads

    # bf16 MXU operands (halves HBM->VMEM DMA bytes); biases stay f32.
    x_bf = x.astype(jnp.bfloat16)
    wq, wk, wv = (w.astype(jnp.bfloat16) for w in (W_q, W_k, W_v))
    bq, bk, bv = (b.reshape(1, H).astype(jnp.float32) for b in (b_q, b_k, b_v))

    w_spec = pl.BlockSpec((H, H), lambda b: (0, 0))   # resident: same block every step
    b_spec = pl.BlockSpec((1, H), lambda b: (0, 0))

    flops = B * (6 * L * H * H + 4 * num_heads * L * L * d_k)
    bytes_accessed = (B * L * H * 2          # x (bf16)
                      + 3 * H * H * 2        # weights (bf16)
                      + 3 * H * 4            # biases (f32)
                      + B * L * H * 4)       # output (f32)
    cost = pl.CostEstimate(flops=flops,
                           transcendentals=B * num_heads * L * L,
                           bytes_accessed=bytes_accessed)

    out = pl.pallas_call(
        partial(mha_kernel, num_heads=num_heads),
        out_shape=jax.ShapeDtypeStruct((B, L, H), jnp.float32),
        grid_spec=pltpu.PrefetchScalarGridSpec(
            num_scalar_prefetch=0,
            grid=(B,),
            in_specs=[
                pl.BlockSpec((1, L, H), lambda b: (b, 0, 0)),
                w_spec, w_spec, w_spec,
                b_spec, b_spec, b_spec,
            ],
            out_specs=pl.BlockSpec((1, L, H), lambda b: (b, 0, 0)),
        ),
        compiler_params=pltpu.CompilerParams(
            dimension_semantics=("parallel",)),
        cost_estimate=cost,
    )(x_bf, wq, wk, wv, bq, bk, bv)

    # Lane-dense (B, L, H) slab -> (B, nh, L, d_k), matching `attended` in the module.
    return out.reshape(B, L, num_heads, d_k).transpose(0, 2, 1, 3)


def mha_reference(x, W_q, W_k, W_v, b_q, b_k, b_v, num_heads):
    """Pure-JAX (f32) mirror of the PyTorch forward (returns `attended`)."""
    B, L, H = x.shape
    d_k = H // num_heads
    q = (x @ W_q + b_q).reshape(B, L, num_heads, d_k).transpose(0, 2, 1, 3)
    k = (x @ W_k + b_k).reshape(B, L, num_heads, d_k).transpose(0, 2, 3, 1)
    v = (x @ W_v + b_v).reshape(B, L, num_heads, d_k).transpose(0, 2, 1, 3)
    s = jnp.matmul(q, k) / jnp.sqrt(jnp.float32(d_k))
    a = jax.nn.softmax(s, axis=-1)
    return jnp.matmul(a, v)


if __name__ == "__main__":
    # Small, TPU-friendly shapes consistent with the module (hidden % num_heads == 0).
    B, L, H, num_heads = 2, 64, 128, 4

    key = jax.random.PRNGKey(0)
    kx, kwq, kwk, kwv, kbq, kbk, kbv = jax.random.split(key, 7)

    x = jax.random.normal(kx, (B, L, H), dtype=jnp.float32)

    # Deterministic nn.Linear-style init: uniform(-1/sqrt(in), 1/sqrt(in)).
    bound = 1.0 / math.sqrt(H)
    W_q = jax.random.uniform(kwq, (H, H), jnp.float32, -bound, bound)
    W_k = jax.random.uniform(kwk, (H, H), jnp.float32, -bound, bound)
    W_v = jax.random.uniform(kwv, (H, H), jnp.float32, -bound, bound)
    b_q = jax.random.uniform(kbq, (H,), jnp.float32, -bound, bound)
    b_k = jax.random.uniform(kbk, (H,), jnp.float32, -bound, bound)
    b_v = jax.random.uniform(kbv, (H,), jnp.float32, -bound, bound)

    attended = multi_head_attention(x, W_q, W_k, W_v, b_q, b_k, b_v, num_heads)
    attended = jax.block_until_ready(attended)

    ref = mha_reference(x, W_q, W_k, W_v, b_q, b_k, b_v, num_heads)
    assert attended.shape == (B, num_heads, L, H // num_heads)
    # bf16 MXU operands + approx reciprocal -> relaxed tolerance vs the f32 reference.
    assert jnp.allclose(attended, ref, atol=3e-2, rtol=3e-2), "mismatch vs reference"

    # TODO(synk): the PyTorch forward only prints shapes and returns None; we return
    # `attended` (B, nh, L, d_k) as the meaningful computed result.
    print("KERNEL_OK")
</pallas_src>

<mosaic_0001>
module attributes {stable_mosaic.version = 11 : i64} {
  func.func @mha_kernel(%arg0: i32, %arg1: memref<1x64x128xbf16, #tpu.memory_space<vmem>>, %arg2: memref<128x128xbf16, #tpu.memory_space<vmem>>, %arg3: memref<128x128xbf16, #tpu.memory_space<vmem>>, %arg4: memref<128x128xbf16, #tpu.memory_space<vmem>>, %arg5: memref<1x128xf32, #tpu.memory_space<vmem>>, %arg6: memref<1x128xf32, #tpu.memory_space<vmem>>, %arg7: memref<1x128xf32, #tpu.memory_space<vmem>>, %arg8: memref<1x64x128xf32, #tpu.memory_space<vmem>>) attributes {dimension_semantics = [#tpu.dimension_semantics<parallel>], iteration_bounds = array<i64: 2>, scalar_prefetch = 0 : i64, scratch_operands = 0 : i64, tpu.core_type = #tpu.core_type<tc>, window_params = [{transform_indices = @transform_0, window_bounds = array<i64: 1, 64, 128>}, {pipeline_mode = #tpu.pipeline_mode<synchronous>, transform_indices = @transform_1, window_bounds = array<i64: 128, 128>}, {pipeline_mode = #tpu.pipeline_mode<synchronous>, transform_indices = @transform_2, window_bounds = array<i64: 128, 128>}, {pipeline_mode = #tpu.pipeline_mode<synchronous>, transform_indices = @transform_3, window_bounds = array<i64: 128, 128>}, {pipeline_mode = #tpu.pipeline_mode<synchronous>, transform_indices = @transform_4, window_bounds = array<i64: 1, 128>}, {pipeline_mode = #tpu.pipeline_mode<synchronous>, transform_indices = @transform_5, window_bounds = array<i64: 1, 128>}, {pipeline_mode = #tpu.pipeline_mode<synchronous>, transform_indices = @transform_6, window_bounds = array<i64: 1, 128>}, {transform_indices = @transform_7, window_bounds = array<i64: 1, 64, 128>}]} {
    %c0 = arith.constant 0 : index
    %c0_0 = arith.constant 0 : index
    %c0_1 = arith.constant 0 : index
    %0 = vector.load %arg1[%c0, %c0_0, %c0_1] : memref<1x64x128xbf16, #tpu.memory_space<vmem>>, vector<1x64x128xbf16>
    %1 = vector.shape_cast %0 : vector<1x64x128xbf16> to vector<64x128xbf16>
    %c0_2 = arith.constant 0 : index
    %c0_3 = arith.constant 0 : index
    %2 = vector.load %arg2[%c0_2, %c0_3] : memref<128x128xbf16, #tpu.memory_space<vmem>>, vector<128x128xbf16>
    %cst = arith.constant dense<0.000000e+00> : vector<64x128xf32>
    %3 = tpu.matmul %1, %2, %cst {dimension_numbers = #tpu.dot_dimension_numbers<[1], [0], [0], [1], [0, 0, 1, 1], [], []>} : vector<64x128xbf16>, vector<128x128xbf16>, vector<64x128xf32> -> vector<64x128xf32>
    %c0_4 = arith.constant 0 : index
    %c0_5 = arith.constant 0 : index
    %4 = vector.load %arg5[%c0_4, %c0_5] : memref<1x128xf32, #tpu.memory_space<vmem>>, vector<1x128xf32>
    %5 = vector.broadcast %4 : vector<1x128xf32> to vector<64x128xf32>
    %6 = arith.addf %3, %5 : vector<64x128xf32>
    %c0_6 = arith.constant 0 : index
    %c0_7 = arith.constant 0 : index
    %7 = vector.load %arg3[%c0_6, %c0_7] : memref<128x128xbf16, #tpu.memory_space<vmem>>, vector<128x128xbf16>
    %cst_8 = arith.constant dense<0.000000e+00> : vector<64x128xf32>
    %8 = tpu.matmul %1, %7, %cst_8 {dimension_numbers = #tpu.dot_dimension_numbers<[1], [0], [0], [1], [0, 0, 1, 1], [], []>} : vector<64x128xbf16>, vector<128x128xbf16>, vector<64x128xf32> -> vector<64x128xf32>
    %c0_9 = arith.constant 0 : index
    %c0_10 = arith.constant 0 : index
    %9 = vector.load %arg6[%c0_9, %c0_10] : memref<1x128xf32, #tpu.memory_space<vmem>>, vector<1x128xf32>
    %10 = vector.broadcast %9 : vector<1x128xf32> to vector<64x128xf32>
    %11 = arith.addf %8, %10 : vector<64x128xf32>
    %c0_11 = arith.constant 0 : index
    %c0_12 = arith.constant 0 : index
    %12 = vector.load %arg4[%c0_11, %c0_12] : memref<128x128xbf16, #tpu.memory_space<vmem>>, vector<128x128xbf16>
    %cst_13 = arith.constant dense<0.000000e+00> : vector<64x128xf32>
    %13 = tpu.matmul %1, %12, %cst_13 {dimension_numbers = #tpu.dot_dimension_numbers<[1], [0], [0], [1], [0, 0, 1, 1], [], []>} : vector<64x128xbf16>, vector<128x128xbf16>, vector<64x128xf32> -> vector<64x128xf32>
    %c0_14 = arith.constant 0 : index
    %c0_15 = arith.constant 0 : index
    %14 = vector.load %arg7[%c0_14, %c0_15] : memref<1x128xf32, #tpu.memory_space<vmem>>, vector<1x128xf32>
    %15 = vector.broadcast %14 : vector<1x128xf32> to vector<64x128xf32>
    %16 = arith.addf %13, %15 : vector<64x128xf32>
    %cst_16 = arith.constant 0.176776692 : f32
    %17 = vector.broadcast %cst_16 : f32 to vector<64x128xf32>
    %18 = arith.mulf %6, %17 : vector<64x128xf32>
    %19 = arith.truncf %18 : vector<64x128xf32> to vector<64x128xbf16>
    %20 = arith.truncf %11 : vector<64x128xf32> to vector<64x128xbf16>
    %21 = arith.truncf %16 : vector<64x128xf32> to vector<64x128xbf16>
    %22 = vector.extract_strided_slice %19 {offsets = [0, 0], sizes = [64, 32], strides = [1, 1]} : vector<64x128xbf16> to vector<64x32xbf16>
    %23 = vector.extract_strided_slice %20 {offsets = [0, 0], sizes = [64, 32], strides = [1, 1]} : vector<64x128xbf16> to vector<64x32xbf16>
    %24 = vector.extract_strided_slice %21 {offsets = [0, 0], sizes = [64, 32], strides = [1, 1]} : vector<64x128xbf16> to vector<64x32xbf16>
    %cst_17 = arith.constant dense<0.000000e+00> : vector<64x64xf32>
    %25 = tpu.matmul %22, %23, %cst_17 {dimension_numbers = #tpu.dot_dimension_numbers<[1], [1], [0], [0], [0, 0, 1, 0], [], []>} : vector<64x32xbf16>, vector<64x32xbf16>, vector<64x64xf32> -> vector<64x64xf32>
    %cst_18 = arith.constant dense<0xFF800000> : vector<64xf32>
    %26 = vector.multi_reduction <maximumf>, %25, %cst_18 [1] : vector<64x64xf32> to vector<64xf32>
    %27 = vector.shape_cast %26 : vector<64xf32> to vector<64x1xf32>
    %28 = vector.broadcast %27 : vector<64x1xf32> to vector<64x64xf32>
    %29 = arith.subf %25, %28 : vector<64x64xf32>
    %30 = math.exp %29 : vector<64x64xf32>
    %cst_19 = arith.constant dense<0.000000e+00> : vector<64xf32>
    %31 = vector.multi_reduction <add>, %30, %cst_19 [1] : vector<64x64xf32> to vector<64xf32>
    %32 = vector.shape_cast %31 : vector<64xf32> to vector<64x1xf32>
    %33 = tpu.reciprocal %32 {approx = true} : vector<64x1xf32> -> vector<64x1xf32>
    %34 = vector.broadcast %33 : vector<64x1xf32> to vector<64x64xf32>
    %35 = arith.mulf %30, %34 : vector<64x64xf32>
    %36 = arith.truncf %35 : vector<64x64xf32> to vector<64x64xbf16>
    %cst_20 = arith.constant dense<0.000000e+00> : vector<64x32xf32>
    %37 = tpu.matmul %36, %24, %cst_20 {dimension_numbers = #tpu.dot_dimension_numbers<[1], [0], [0], [1], [0, 0, 1, 1], [], []>} : vector<64x64xbf16>, vector<64x32xbf16>, vector<64x32xf32> -> vector<64x32xf32>
    %38 = vector.extract_strided_slice %19 {offsets = [0, 32], sizes = [64, 32], strides = [1, 1]} : vector<64x128xbf16> to vector<64x32xbf16>
    %39 = vector.extract_strided_slice %20 {offsets = [0, 32], sizes = [64, 32], strides = [1, 1]} : vector<64x128xbf16> to vector<64x32xbf16>
    %40 = vector.extract_strided_slice %21 {offsets = [0, 32], sizes = [64, 32], strides = [1, 1]} : vector<64x128xbf16> to vector<64x32xbf16>
    %cst_21 = arith.constant dense<0.000000e+00> : vector<64x64xf32>
    %41 = tpu.matmul %38, %39, %cst_21 {dimension_numbers = #tpu.dot_dimension_numbers<[1], [1], [0], [0], [0, 0, 1, 0], [], []>} : vector<64x32xbf16>, vector<64x32xbf16>, vector<64x64xf32> -> vector<64x64xf32>
    %cst_22 = arith.constant dense<0xFF800000> : vector<64xf32>
    %42 = vector.multi_reduction <maximumf>, %41, %cst_22 [1] : vector<64x64xf32> to vector<64xf32>
    %43 = vector.shape_cast %42 : vector<64xf32> to vector<64x1xf32>
    %44 = vector.broadcast %43 : vector<64x1xf32> to vector<64x64xf32>
    %45 = arith.subf %41, %44 : vector<64x64xf32>
    %46 = math.exp %45 : vector<64x64xf32>
    %cst_23 = arith.constant dense<0.000000e+00> : vector<64xf32>
    %47 = vector.multi_reduction <add>, %46, %cst_23 [1] : vector<64x64xf32> to vector<64xf32>
    %48 = vector.shape_cast %47 : vector<64xf32> to vector<64x1xf32>
    %49 = tpu.reciprocal %48 {approx = true} : vector<64x1xf32> -> vector<64x1xf32>
    %50 = vector.broadcast %49 : vector<64x1xf32> to vector<64x64xf32>
    %51 = arith.mulf %46, %50 : vector<64x64xf32>
    %52 = arith.truncf %51 : vector<64x64xf32> to vector<64x64xbf16>
    %cst_24 = arith.constant dense<0.000000e+00> : vector<64x32xf32>
    %53 = tpu.matmul %52, %40, %cst_24 {dimension_numbers = #tpu.dot_dimension_numbers<[1], [0], [0], [1], [0, 0, 1, 1], [], []>} : vector<64x64xbf16>, vector<64x32xbf16>, vector<64x32xf32> -> vector<64x32xf32>
    %54 = vector.extract_strided_slice %19 {offsets = [0, 64], sizes = [64, 32], strides = [1, 1]} : vector<64x128xbf16> to vector<64x32xbf16>
    %55 = vector.extract_strided_slice %20 {offsets = [0, 64], sizes = [64, 32], strides = [1, 1]} : vector<64x128xbf16> to vector<64x32xbf16>
    %56 = vector.extract_strided_slice %21 {offsets = [0, 64], sizes = [64, 32], strides = [1, 1]} : vector<64x128xbf16> to vector<64x32xbf16>
    %cst_25 = arith.constant dense<0.000000e+00> : vector<64x64xf32>
    %57 = tpu.matmul %54, %55, %cst_25 {dimension_numbers = #tpu.dot_dimension_numbers<[1], [1], [0], [0], [0, 0, 1, 0], [], []>} : vector<64x32xbf16>, vector<64x32xbf16>, vector<64x64xf32> -> vector<64x64xf32>
    %cst_26 = arith.constant dense<0xFF800000> : vector<64xf32>
    %58 = vector.multi_reduction <maximumf>, %57, %cst_26 [1] : vector<64x64xf32> to vector<64xf32>
    %59 = vector.shape_cast %58 : vector<64xf32> to vector<64x1xf32>
    %60 = vector.broadcast %59 : vector<64x1xf32> to vector<64x64xf32>
    %61 = arith.subf %57, %60 : vector<64x64xf32>
    %62 = math.exp %61 : vector<64x64xf32>
    %cst_27 = arith.constant dense<0.000000e+00> : vector<64xf32>
    %63 = vector.multi_reduction <add>, %62, %cst_27 [1] : vector<64x64xf32> to vector<64xf32>
    %64 = vector.shape_cast %63 : vector<64xf32> to vector<64x1xf32>
    %65 = tpu.reciprocal %64 {approx = true} : vector<64x1xf32> -> vector<64x1xf32>
    %66 = vector.broadcast %65 : vector<64x1xf32> to vector<64x64xf32>
    %67 = arith.mulf %62, %66 : vector<64x64xf32>
    %68 = arith.truncf %67 : vector<64x64xf32> to vector<64x64xbf16>
    %cst_28 = arith.constant dense<0.000000e+00> : vector<64x32xf32>
    %69 = tpu.matmul %68, %56, %cst_28 {dimension_numbers = #tpu.dot_dimension_numbers<[1], [0], [0], [1], [0, 0, 1, 1], [], []>} : vector<64x64xbf16>, vector<64x32xbf16>, vector<64x32xf32> -> vector<64x32xf32>
    %70 = vector.extract_strided_slice %19 {offsets = [0, 96], sizes = [64, 32], strides = [1, 1]} : vector<64x128xbf16> to vector<64x32xbf16>
    %71 = vector.extract_strided_slice %20 {offsets = [0, 96], sizes = [64, 32], strides = [1, 1]} : vector<64x128xbf16> to vector<64x32xbf16>
    %72 = vector.extract_strided_slice %21 {offsets = [0, 96], sizes = [64, 32], strides = [1, 1]} : vector<64x128xbf16> to vector<64x32xbf16>
    %cst_29 = arith.constant dense<0.000000e+00> : vector<64x64xf32>
    %73 = tpu.matmul %70, %71, %cst_29 {dimension_numbers = #tpu.dot_dimension_numbers<[1], [1], [0], [0], [0, 0, 1, 0], [], []>} : vector<64x32xbf16>, vector<64x32xbf16>, vector<64x64xf32> -> vector<64x64xf32>
    %cst_30 = arith.constant dense<0xFF800000> : vector<64xf32>
    %74 = vector.multi_reduction <maximumf>, %73, %cst_30 [1] : vector<64x64xf32> to vector<64xf32>
    %75 = vector.shape_cast %74 : vector<64xf32> to vector<64x1xf32>
    %76 = vector.broadcast %75 : vector<64x1xf32> to vector<64x64xf32>
    %77 = arith.subf %73, %76 : vector<64x64xf32>
    %78 = math.exp %77 : vector<64x64xf32>
    %cst_31 = arith.constant dense<0.000000e+00> : vector<64xf32>
    %79 = vector.multi_reduction <add>, %78, %cst_31 [1] : vector<64x64xf32> to vector<64xf32>
    %80 = vector.shape_cast %79 : vector<64xf32> to vector<64x1xf32>
    %81 = tpu.reciprocal %80 {approx = true} : vector<64x1xf32> -> vector<64x1xf32>
    %82 = vector.broadcast %81 : vector<64x1xf32> to vector<64x64xf32>
    %83 = arith.mulf %78, %82 : vector<64x64xf32>
    %84 = arith.truncf %83 : vector<64x64xf32> to vector<64x64xbf16>
    %cst_32 = arith.constant dense<0.000000e+00> : vector<64x32xf32>
    %85 = tpu.matmul %84, %72, %cst_32 {dimension_numbers = #tpu.dot_dimension_numbers<[1], [0], [0], [1], [0, 0, 1, 1], [], []>} : vector<64x64xbf16>, vector<64x32xbf16>, vector<64x32xf32> -> vector<64x32xf32>
    %86 = tpu.concatenate %37, %53, %69, %85 in 1 : vector<64x32xf32>, vector<64x32xf32>, vector<64x32xf32>, vector<64x32xf32> -> vector<64x128xf32>
    %c0_33 = arith.constant 0 : index
    %c0_34 = arith.constant 0 : index
    %c0_35 = arith.constant 0 : index
    %87 = vector.load %arg8[%c0_33, %c0_34, %c0_35] : memref<1x64x128xf32, #tpu.memory_space<vmem>>, vector<1x64x128xf32>
    %88 = vector.shape_cast %87 : vector<1x64x128xf32> to vector<64x128xf32>
    %89 = vector.shape_cast %86 : vector<64x128xf32> to vector<1x64x128xf32>
    tpu.vector_store %arg8[%c0_33, %c0_34, %c0_35], %89 {strides = array<i32>} : memref<1x64x128xf32, #tpu.memory_space<vmem>>, vector<1x64x128xf32>,
    return
  }
  func.func @transform_0(%arg0: i32) -> (i32, i32, i32) {
    %c0_i32 = arith.constant 0 : i32
    %c0_i32_0 = arith.constant 0 : i32
    %c0_i32_1 = arith.constant 0 : i32
    return %arg0, %c0_i32, %c0_i32_0 : i32, i32, i32
  }
  func.func @transform_1(%arg0: i32) -> (i32, i32) {
    %c0_i32 = arith.constant 0 : i32
    %c0_i32_0 = arith.constant 0 : i32
    %c0_i32_1 = arith.constant 0 : i32
    return %c0_i32, %c0_i32_0 : i32, i32
  }
  func.func @transform_2(%arg0: i32) -> (i32, i32) {
    %c0_i32 = arith.constant 0 : i32
    %c0_i32_0 = arith.constant 0 : i32
    %c0_i32_1 = arith.constant 0 : i32
    return %c0_i32, %c0_i32_0 : i32, i32
  }
  func.func @transform_3(%arg0: i32) -> (i32, i32) {
    %c0_i32 = arith.constant 0 : i32
    %c0_i32_0 = arith.constant 0 : i32
    %c0_i32_1 = arith.constant 0 : i32
    return %c0_i32, %c0_i32_0 : i32, i32
  }
  func.func @transform_4(%arg0: i32) -> (i32, i32) {
    %c0_i32 = arith.constant 0 : i32
    %c0_i32_0 = arith.constant 0 : i32
    %c0_i32_1 = arith.constant 0 : i32
    return %c0_i32, %c0_i32_0 : i32, i32
  }
  func.func @transform_5(%arg0: i32) -> (i32, i32) {
    %c0_i32 = arith.constant 0 : i32
    %c0_i32_0 = arith.constant 0 : i32
    %c0_i32_1 = arith.constant 0 : i32
    return %c0_i32, %c0_i32_0 : i32, i32
  }
  func.func @transform_6(%arg0: i32) -> (i32, i32) {
    %c0_i32 = arith.constant 0 : i32
    %c0_i32_0 = arith.constant 0 : i32
    %c0_i32_1 = arith.constant 0 : i32
    return %c0_i32, %c0_i32_0 : i32, i32
  }
  func.func @transform_7(%arg0: i32) -> (i32, i32, i32) {
    %c0_i32 = arith.constant 0 : i32
    %c0_i32_0 = arith.constant 0 : i32
    %c0_i32_1 = arith.constant 0 : i32
    return %arg0, %c0_i32, %c0_i32_0 : i32, i32, i32
  }
}

</mosaic_0001>

<bundles_post_ra>
// kernel: tpu_custom_call.1
= control target key start
LH: loop header
LB: loop body
LE: loop exit
PB: predicated region body
PF: predicated region fallthrough
CT: control target
= control target key end

     0   :  { %s3300_s0 = inlined_call_operand.hbm [shape: bf16[2,64,128], index: 0, kind: input, shape index: {}]   ;;  %s3301_s1 = inlined_call_operand.hbm [shape: bf16[128,128], index: 1, kind: input, shape index: {}]   ;;  %s3302_s2 = inlined_call_operand.hbm [shape: bf16[128,128], index: 2, kind: input, shape index: {}]   ;;  %s3303_s3 = inlined_call_operand.hbm [shape: bf16[128,128], index: 3, kind: input, shape index: {}]   ;;  %s3304_s4 = inlined_call_operand.vmem [shape: f32[1,128], index: 4, kind: input, shape index: {}]   ;;  %s3305_s5 = inlined_call_operand.vmem [shape: f32[1,128], index: 5, kind: input, shape index: {}]   ;;  %s3306_s6 = inlined_call_operand.vmem [shape: f32[1,128], index: 6, kind: input, shape index: {}]   ;;  %s3307_s7 = inlined_call_operand.hbm [shape: f32[2,64,128], index: 7, kind: output, shape index: {}]  }
   0x1   :  { %3310 = sst [smem:[#allocation15_spill]] %s3301_s1 }
   0x2   :  { %12 = vsyncpa [#allocation3], 0 }
   0x3   :  { %14 = vsyncpa [#allocation3 + $0x1], 0 }
   0x4   :  { %15 = vsyncpa [#allocation6], 0 }
   0x5   :  { %16 = vsyncpa [#allocation9], 0 }
   0x6   :  { %17 = vsyncpa [#allocation4], 0 }
   0x7   :  { %19 = vsyncpa [#allocation4 + $0x1], 0  ;;  %s2517_s24 = smov 0   ;;  %s2519_s25 = smov 0  }
   0x8   :  { %s2521_s26 = smov 0   ;;  %s2523_s27 = smov 0  }
   0x9 LB: > { %s2538_s28 = sadd.s32 4294967295, %s2465_s27   ;;  %s1846_s29 = sadd.s32 4294967294, %s2465_s27   ;;  %s2465_s27 = sphi %s2523_s27, %s3324_s27   ;;  %s2461_s26 = sphi %s2521_s26, %s3323_s26   ;;  %s2457_s25 = sphi %s2519_s25, %s3322_s25   ;;  %s2453_s24 = sphi %s2517_s24, %s3321_s24  }
   0xa   : > { %p45_p0 = scmp.ne.s32.totalorder %s2457_s25, %s2453_s24  ;;  %p46_p1 = scmp.eq.s32.totalorder %s2538_s28, 0 }
   0xb   : > { %p195_p2 = scmp.eq.s32.totalorder %s2538_s28, 1  ;;  %p201_p3 = scmp.eq.s32.totalorder %s1846_s29, 1 }
   0xc   : > { %p2547_p4 = por %p46_p1, %p45_p0  ;;  %p1847_p5 = scmp.ge.s32.totalorder %s2465_s27, 1 }
   0xd   : > { %p2552_p6 = por %p201_p3, %p45_p0  ;;  %p208_p7 = scmp.lt.s32.totalorder %s2465_s27, 3 }
   0xe   : > { %s3313_s1 = sld [smem:[#allocation15_spill]]  ;;  %s2467_s13 = smov [#allocation5]  }
   0xf   : > { %p2560_p8 = pnand %p1847_p5, %p208_p7  ;;  %s221_s14 = sshll.u32 %s2467_s13, 4  ;;  %s222_s14 = int_to_ptr.vmem [resolvable:$true] %s221_s14 }
  0x10   : > { %s233_s18 = sshll.u32 %s3302_s2, 4  ;;  %s3308_s19 = smov 64   ;;  %s234_s18 = int_to_ptr.hbm [resolvable:$true] %s233_s18 }
  0x11   : > { %p2072_p9 = pneg %p2560_p8  ;;  %s3309_s20 = smov 4  }
  0x12   : > { %s2470_s21 = smov [#allocation7]   ;;  %s247_s9 = sshll.u32 %s3303_s3, 4  ;;  %s248_s9 = int_to_ptr.hbm [resolvable:$true] %s247_s9 }
  0x13   : > { %p2568_p10 = pnand %p2072_p9, %p46_p1  ;;  %s235_s22 = sshll.u32 %s2470_s21, 4  ;;  %s236_s22 = int_to_ptr.vmem [resolvable:$true] %s235_s22 }
  0x14   : > { %s219_s11 = sshll.u32 %s3313_s1, 4  ;;  %s2471_s10 = smov [#allocation8]   ;;  %s220_s11 = int_to_ptr.hbm [resolvable:$true] %s219_s11 }
  0x15   : > { %2075 = dma.hbm_to_vmem [thread:$0]  (!%p2568_p10), %s220_s11, 1024, %s222_s14, [#allocation6], %s3308_s19, %s3308_s19, %s3309_s20  }
  0x16   : > { %2078 = dma.hbm_to_vmem [thread:$0]  (!%p2568_p10), %s234_s18, 1024, %s236_s22, [#allocation6], %s3308_s19, %s3308_s19, %s3309_s20  }
  0x17   : > { %s249_s11 = sshll.u32 %s2471_s10, 4  ;;  %s2590_s13 = sadd.s32 1, %s2465_s27   ;;  %s250_s11 = int_to_ptr.vmem [resolvable:$true] %s249_s11 }
  0x18   : > { %2081 = dma.hbm_to_vmem [thread:$0]  (!%p2568_p10), %s248_s9, 1024, %s250_s11, [#allocation9], %s3308_s19, %s3308_s19, %s3309_s20  }
  0x19   : > { %s29_s14 = ssub.s32 %s2465_s27, %s2590_s13  ;;  %s32_s16 = sadd.s32 1, %s2461_s26 }
  0x1a   : > { %p30_p12 = scmp.eq.s32.totalorder %s29_s14, 0  ;;  %p39_p13 = scmp.ne.s32.totalorder %s2461_s26, %s2457_s25 }
  0x1b   : > { %p40_p0 = scmp.eq.s32.totalorder %s2465_s27, 0  ;;  %p2093_p5 = scmp.lt.s32.totalorder %s2465_s27, 2 }
  0x1c   : > { %s2604_s17 = scalar_select %p30_p12, %s2461_s26, %s32_s16  }
  0x1d   : > { %p2608_p3 = por %p195_p2, %p39_p13  ;;  %s272_s21 = sand.u32 1, %s2461_s26  }
  0x1e   : > { %s2010_s15 = sshll.u32 %s2465_s27, 5  ;;  %p41_p7 = por %p40_p0, %p39_p13 }
  0x1f   : > { %s1852_s22 = sshll.u32 %s272_s21, 5  ;;  %s281_s9 = scalar_lea.hbm %s3300_s0, %s2010_s15 }
  0x20   : > { %s282_s10 = sshll.u32 %s281_s9, 4  ;;  %s276_s11 = scalar_lea.vmem [#allocation2], %s1852_s22  ;;  %s283_s10 = int_to_ptr.hbm [resolvable:$true] %s282_s10 }
  0x21   : > { %s284_s14 = sshll.u32 %s276_s11, 4  ;;  %p2618_p9 = pnand %p2093_p5, %p41_p7  ;;  %s285_s14 = int_to_ptr.vmem [resolvable:$true] %s284_s14 }
  0x22   : > { %s273_s19 = scalar_lea.sflag [#allocation3], %s272_s21  ;;  %s2361_s20 = sshra.s32 %s283_s10, 4  ;;  %s2362_s20 = int_to_ptr.hbm [resolvable:$true] %s2361_s20 }
  0x23   : > { %s2363_s1 = scalar_lea.hbm %s2362_s20, 32  ;;  %p2365_p10 = pneg %p2618_p9 }
  0x24   : > { %p2364_p2 = scmp.ne.s32.totalorder %s2362_s20, %s2363_s1  ;;  %s2368_s22 = scalar_lea.hbm %s3300_s0, 64 }
  0x25   : > { %p2369_p0 = scmp.lt.s32.totalorder %s2362_s20, %s3300_s0  ;;  %p2370_p5 = scmp.lt.s32.totalorder %s2368_s22, %s2363_s1 }
  0x26   : > { %p2366_p12 = pnand %p2365_p10, %p2364_p2 }
  0x27   : > { %p2371_p7 = por %p2370_p5, %p2369_p0 }
  0x28   : > { %p2367_p13 = pneg %p2366_p12 }
  0x2a   : > { %p2372_p11 = pnand %p2371_p7, %p2367_p13 }
  0x2c   : > { %2375 = shalt.err (!%p2372_p11)
}
  0x2d   : > { %s3318_s21 = smov 4   ;;  %s3319_s11 = smov 64  }
  0x2e   : > { %2085 = dma.hbm_to_vmem [thread:$0]  (!%p2618_p9), %s283_s10, 512, %s285_s14, %s273_s19, %s3319_s11, %s3319_s11, %s3318_s21  }
  0x2f   : > { %296 = sbr.rel (%p2560_p8) target bundleno = 1762 (0x6e2), region = 48  ;;  %s2638_s15 = sand.u32 (!%p2560_p8), 1, %s2457_s25  }
  0x30   : > { %s1856_s20 = sshll.u32 (!%p2560_p8), %s2638_s15, 5  ;;  %s299_s1 = scalar_lea.sflag (!%p2560_p8), [#allocation3], %s2638_s15 }
  0x31   : > { %s2642_s23 = scalar_lea.vmem (!%p2560_p8), [#allocation2], %s1856_s20 }
  0x34   : > { %2436 = dma.done.wait (%p2547_p4), %s299_s1, 512  }
  0x35   : > { %2438 = vsyncadd (%p2547_p4), %s299_s1, 4294966784 }
  0x36   : > { %2440 = dma.done.wait (%p46_p1), [#allocation6], 2048  }
  0x37   : > { %2442 = vsyncadd (%p46_p1), [#allocation6], 4294965248 }
  0x38   : > { %2444 = dma.done.wait (%p46_p1), [#allocation9], 1024  }
  0x39   : > { %2446 = vsyncadd (%p46_p1), [#allocation9], 4294966272  ;;  %v2030_v0 = vld [vmem:[#allocation7 + $0x38] sm:$0xff]  ;;  %v2029_v1 = vld [vmem:[#allocation7 + $0x30] sm:$0xff]  ;;  %s2472_s19 = smov 96   ;;  %vm745_vm0 = vcmask 261120  }
  0x3a   : > { %547 = vmatpush.bf16.msra.mxu1 %v2030_v0  ;;  %v2028_v2 = vld [vmem:[#allocation7 + $0x28] sm:$0xff]  ;;  %v2027_v3 = vld [vmem:[#allocation7 + $0x20] sm:$0xff]  ;;  %v2026_v4 = vld [vmem:[#allocation7 + $0x18] sm:$0xff]  ;;  %vm799_vm1 = vcmask 523264   ;;  %s2473_s29 = smov 64   ;;  %s2474_s9 = smov 32  }
  0x3b   : > { %v2025_v5 = vld [vmem:[#allocation7 + $0x10] sm:$0xff]  ;;  %v2024_v6 = vld [vmem:[#allocation7 + $0x8] sm:$0xff]  ;;  %v2023_v7 = vld [vmem:[#allocation7] sm:$0xff]  ;;  %s1860_s21 = sshll.u32 %s2638_s15, 6  ;;  %vm1711_vm2 = vcmask 785408   ;;  %s2039_s20 = sshll.u32 %s2538_s28, 6 }
  0x3c   : > { %v2011_v8 = vld [vmem:[%s2642_s23] sm:$0xff]  ;;  %v2022_v9 = vld [vmem:[#allocation5 + $0x38] sm:$0xff]  ;;  %v2021_v11 = vld [vmem:[#allocation5 + $0x30] sm:$0xff]  ;;  %s3225_s11 = scalar_lea.vmem [#allocation10], %s1860_s21  ;;  %s1740_s30 = scalar_lea.hbm %s3307_s7, %s2039_s20 }
  0x3d   : > { %v2038_v10 = vld [vmem:[#allocation8 + $0x38] sm:$0xff]  ;;  %450 = vmatpush.bf16.msra.mxu0 %v2022_v9  ;;  %v2037_v12 = vld [vmem:[#allocation8 + $0x30] sm:$0xff]  ;;  %2040 = vmatpush.bf16.msra.mxu3 %v2022_v9  ;;  %v2020_v13 = vld [vmem:[#allocation5 + $0x28] sm:$0xff]  ;;  %s1741_s28 = sshll.u32 %s3225_s11, 4  ;;  %s1743_s12 = sshll.u32 %s1740_s30, 4  ;;  %s3262_s28 = int_to_ptr.vmem [resolvable:$true] %s1741_s28  ;;  %s1744_s12 = int_to_ptr.hbm [resolvable:$true] %s1743_s12 }
  0x3e   : > { %548 = vmatpush.bf16.msra.mxu1 %v2029_v1  ;;  %644 = vmatpush.bf16.msra.mxu2 %v2038_v10  ;;  %v2012_v14 = vld [vmem:[%s2642_s23 + $0x8] sm:$0xff]  ;;  %v2019_v16 = vld [vmem:[#allocation5 + $0x20] sm:$0xff]  ;;  %v2018_v18 = vld [vmem:[#allocation5 + $0x18] sm:$0xff]  ;;  %s2405_s10 = sshra.s32 %s1744_s12, 4  ;;  %s2406_s10 = int_to_ptr.hbm [resolvable:$true] %s2405_s10 }
  0x3f   : > { %v2036_v15 = vld [vmem:[#allocation8 + $0x28] sm:$0xff]  ;;  %v2035_v17 = vld [vmem:[#allocation8 + $0x20] sm:$0xff]  ;;  %v2034_v19 = vld [vmem:[#allocation8 + $0x18] sm:$0xff]  ;;  %s2407_s14 = scalar_lea.hbm %s2406_s10, 64  ;;  %p2412_p11 = scmp.lt.s32.totalorder %s2406_s10, %s3307_s7 }
  0x40   : > { %v2017_v20 = vld [vmem:[#allocation5 + $0x10] sm:$0xff]  ;;  %v2016_v22 = vld [vmem:[#allocation5 + $0x8] sm:$0xff]  ;;  %v2015_v25 = vld [vmem:[#allocation5] sm:$0xff]  ;;  %p2408_p1 = scmp.ne.s32.totalorder %s2406_s10, %s2407_s14 }
  0x41   : > { %451 = vmatpush.bf16.msra.mxu0 %v2021_v11  ;;  %2041 = vmatpush.bf16.msra.mxu3 %v2021_v11  ;;  %v2033_v21 = vld [vmem:[#allocation8 + $0x10] sm:$0xff]  ;;  %v2032_v24 = vld [vmem:[#allocation8 + $0x8] sm:$0xff]  ;;  %v2031_v26 = vld [vmem:[#allocation8] sm:$0xff] }
  0x42   : > { %549 = vmatpush.bf16.msra.mxu1 %v2028_v2  ;;  %645 = vmatpush.bf16.msra.mxu2 %v2037_v12  ;;  %v2013_v23 = vld [vmem:[%s2642_s23 + $0x10] sm:$0xff]  ;;  %v2014_v27 = vld [vmem:[%s2642_s23 + $0x18] sm:$0xff]  ;;  %v2140_v29 = vld [vmem:[%s3305_s5] ss:$0 sm:$0xff]  ;;  %p2409_p4 = pnand %p2408_p1, %p2608_p3 }
  0x43   : > { %v2686_v9 = vld [vmem:[%s3304_s4] ss:$0 sm:$0xff] }
  0x44   : > { %p2410_p8 = pneg %p2409_p4 }
  0x45   : > { %452 = vmatpush.bf16.msra.mxu0 %v2020_v13  ;;  %2042 = vmatpush.bf16.msra.mxu3 %v2020_v13 }
  0x46   : > { %550 = vmatpush.bf16.msra.mxu1 %v2027_v3  ;;  %646 = vmatpush.bf16.msra.mxu2 %v2036_v15 }
  0x49   : > { %453 = vmatpush.bf16.msra.mxu0 %v2019_v16  ;;  %2043 = vmatpush.bf16.msra.mxu3 %v2019_v16 }
  0x4a   : > { %551 = vmatpush.bf16.msra.mxu1 %v2026_v4  ;;  %647 = vmatpush.bf16.msra.mxu2 %v2035_v17 }
  0x4d   : > { %454 = vmatpush.bf16.msra.mxu0 %v2018_v18  ;;  %2044 = vmatpush.bf16.msra.mxu3 %v2018_v18 }
  0x4e   : > { %552 = vmatpush.bf16.msra.mxu1 %v2025_v5  ;;  %648 = vmatpush.bf16.msra.mxu2 %v2034_v19 }
  0x51   : > { %455 = vmatpush.bf16.msra.mxu0 %v2017_v20  ;;  %2045 = vmatpush.bf16.msra.mxu3 %v2017_v20 }
  0x52   : > { %553 = vmatpush.bf16.msra.mxu1 %v2024_v6  ;;  %649 = vmatpush.bf16.msra.mxu2 %v2033_v21 }
  0x55   : > { %456 = vmatpush.bf16.msra.mxu0 %v2016_v22  ;;  %2046 = vmatpush.bf16.msra.mxu3 %v2016_v22 }
  0x56   : > { %554 = vmatpush.bf16.msra.mxu1 %v2023_v7  ;;  %650 = vmatpush.bf16.msra.mxu2 %v2032_v24 }
  0x59   : > { %555 = vmatmul.bf16.vlgmr.msra.gmra.mxu1 %v2011_v8  ;;  %457 = vmatpush.bf16.msra.mxu0 %v2015_v25 }
  0x5a   : > { %2047 = vmatpush.bf16.msra.mxu3 %v2015_v25  ;;  %651 = vmatpush.bf16.msra.mxu2 %v2031_v26 }
  0x5c   : > { %458 = vmatmul.bf16.vlgmr.msra.gmra.mxu0 %v2011_v8 }
  0x5d   : > { %463 = vmatmul.bf16.vlgmr.msra.gmra.mxu3 %v2012_v14  ;;  %652 = vmatmul.bf16.vlgmr.msra.gmra.mxu2 %v2011_v8 }
  0x69   : > { %560 = vmatmul.bf16.gmra.mxu1 %v2012_v14 }
  0x6d   : > { %468 = vmatmul.bf16.gmra.mxu3 %v2013_v23  ;;  %657 = vmatmul.bf16.gmra.mxu2 %v2012_v14 }
  0x79   : > { %565 = vmatmul.bf16.gmra.mxu1 %v2013_v23 }
  0x7d   : > { %473 = vmatmul.bf16.gmra.mxu3 %v2014_v27  ;;  %662 = vmatmul.bf16.gmra.mxu2 %v2013_v23 }
  0x89   : > { %570 = vmatmul.bf16.gmra.mxu1 %v2014_v27 }
  0x8d   : > { %667 = vmatmul.bf16.gmra.mxu2 %v2014_v27  ;;  %v2142_v27 = vld [vmem:[%s3306_s6] ss:$0 sm:$0xff] }
  0xd6   : > { %v556_v28 = vpop.f32.mrf.mxu1 }
  0xd7   : > { %v557_v30 = vadd.f32 %v2140_v29, %v556_v28 }
  0xd9   : > { %v689_v32 = vpack.c.bf16 %v557_v30, %v557_v30  ;;  %v459_v5 = vpop.f32.mrf.mxu0 }
  0xda   : > { %v460_v11 = vadd.f32 %v2686_v9, %v459_v5 }
  0xdb   : > { %v733_v35 = vunpack.c.l.b16 %v689_v32 }
  0xdc   : > { %v673_v16 = vmul.f32 0.17677669, %v460_v11 }
  0xde   : > { %v558_v31 = vpop.f32.mrf.mxu1  ;;  %v681_v18 = vpack.c.bf16 %v673_v16, %v673_v16 }
  0xdf   : > { %v559_v33 = vadd.f32 %v2140_v29, %v558_v31 }
  0xe0   : > { %v2671_v56 = vpop.f32.mrf.mxu2  ;;  %v464_v7 = vpop.f32.mrf.mxu3  ;;  %v713_v22 = vunpack.c.l.b16 %v681_v18 }
  0xe1   : > { %v690_v34 = vpack.c.bf16 %v559_v33, %v559_v33  ;;  %v461_v10 = vpop.f32.mrf.mxu0  ;;  %v465_v25 = vadd.f32 %v2686_v9, %v464_v7 }
  0xe2   : > { %v462_v12 = vadd.f32 %v2686_v9, %v461_v10 }
  0xe3   : > { %v734_v36 = vunpack.c.l.b16 %v690_v34  ;;  %v675_v30 = vmul.f32 0.17677669, %v465_v25 }
  0xe4   : > { %v674_v17 = vmul.f32 0.17677669, %v462_v12 }
  0xe5   : > { %v2663_v37 = vpack.c.b16 %v734_v36, %v733_v35  ;;  %v683_v35 = vpack.c.bf16 %v675_v30, %v675_v30 }
  0xe6   : > { %v561_v38 = vpop.f32.mrf.mxu1  ;;  %v682_v19 = vpack.c.bf16 %v674_v17, %v674_v17 }
  0xe7   : > { %v562_v39 = vadd.f32 %v2140_v29, %v561_v38  ;;  %v759_v21 = vsel %vm745_vm0, %v2663_v37, 0 }
  0xe8   : > { %v655_v59 = vpop.f32.mrf.mxu2  ;;  %v466_v15 = vpop.f32.mrf.mxu3  ;;  %v714_v23 = vunpack.c.l.b16 %v682_v19 }
  0xe9   : > { %v691_v41 = vpack.c.bf16 %v562_v39, %v562_v39  ;;  %v467_v26 = vadd.f32 %v2686_v9, %v466_v15 }
  0xea   : > { %v2699_v28 = vpack.c.b16 %v714_v23, %v713_v22 }
  0xeb   : > { %v735_v44 = vunpack.c.l.b16 %v691_v41  ;;  %v676_v31 = vmul.f32 0.17677669, %v467_v26 }
  0xed   : > { %v684_v36 = vpack.c.bf16 %v676_v31, %v676_v31 }
  0xee   : > { %v563_v40 = vpop.f32.mrf.mxu1 }
  0xef   : > { %v564_v42 = vadd.f32 %v2140_v29, %v563_v40 }
  0xf0   : > { %v658_v3 = vpop.f32.mrf.mxu2  ;;  %v469_v24 = vpop.f32.mrf.mxu3 }
  0xf1   : > { %v692_v43 = vpack.c.bf16 %v564_v42, %v564_v42  ;;  %v659_v40 = vadd.f32 %v2142_v27, %v658_v3 }
  0xf3   : > { %v736_v45 = vunpack.c.l.b16 %v692_v43 }
  0xf5   : > { %v2665_v46 = vpack.c.b16 %v736_v45, %v735_v44 }
  0xf6   : > { %v566_v47 = vpop.f32.mrf.mxu1 }
  0xf7   : > { %967 = vrot.lane.b32.xlu1 %v2665_v46, %s2472_s19  ;;  %v567_v48 = vadd.f32 %v2140_v29, %v566_v47  ;;  %v762_v14 = vsel %vm745_vm0, %v2665_v46, 0  ;;  %v715_v47 = vunpack.c.l.b16 %v683_v35 }
  0xf8   : > { %v660_v6 = vpop.f32.mrf.mxu2  ;;  %v471_v38 = vpop.f32.mrf.mxu3 }
  0xf9   : > { %v693_v50 = vpack.c.bf16 %v567_v48, %v567_v48  ;;  %v661_v42 = vadd.f32 %v2142_v27, %v660_v6  ;;  %v716_v48 = vunpack.c.l.b16 %v684_v36 }
  0xfb   : > { %v737_v53 = vunpack.c.l.b16 %v693_v50 }
  0xfe   : > { %v568_v49 = vpop.f32.mrf.mxu1 }
  0xff   : > { %v569_v51 = vadd.f32 %v2140_v29, %v568_v49 }
 0x100   : > { %v663_v13 = vpop.f32.mrf.mxu2 }
 0x101   : > { %v694_v52 = vpack.c.bf16 %v569_v51, %v569_v51  ;;  %v664_v33 = vadd.f32 %v2142_v27, %v663_v13  ;;  %v654_v51 = vadd.f32 %v2142_v27, %v2671_v56  ;;  %v474_v56 = vpop.f32.mrf.mxu3 }
 0x102   : > { %v475_v19 = vadd.f32 %v2686_v9, %v474_v56 }
 0x103   : > { %v738_v54 = vunpack.c.l.b16 %v694_v52  ;;  %v701_v43 = vpack.c.bf16 %v664_v33, %v664_v33  ;;  %v656_v52 = vadd.f32 %v2142_v27, %v655_v59 }
 0x105   : > { %v2669_v55 = vpack.c.b16 %v738_v54, %v737_v53  ;;  %v699_v53 = vpack.c.bf16 %v659_v40, %v659_v40  ;;  %v700_v54 = vpack.c.bf16 %v661_v42, %v661_v42  ;;  %v698_v3 = vpack.c.bf16 %v656_v52, %v656_v52 }
 0x106   : > { %v571_v57 = vpop.f32.mrf.mxu1 }
 0x107   : > { %969 = vrot.lane.b32.xlu0 %v2669_v55, %s2472_s19  ;;  %v572_v58 = vadd.f32 %v2140_v29, %v571_v57  ;;  %v765_v8 = vsel %vm745_vm0, %v2669_v55, 0  ;;  %v904_v57 = vunpack.c.l.b16 %v701_v43  ;;  %v903_v5 = vunpack.c.l.b16 %v700_v54 }
 0x108   : > { %v665_v20 = vpop.f32.mrf.mxu2  ;;  %v901_v10 = vunpack.c.l.b16 %v698_v3 }
 0x109   : > { %v695_v61 = vpack.c.bf16 %v572_v58, %v572_v58  ;;  %v666_v34 = vadd.f32 %v2142_v27, %v665_v20  ;;  %v476_v17 = vpop.f32.mrf.mxu3 }
 0x10a   : > { %v477_v20 = vadd.f32 %v2686_v9, %v476_v17 }
 0x10b   : > { %v739_v0 = vunpack.c.l.b16 %v695_v61  ;;  %v702_v44 = vpack.c.bf16 %v666_v34, %v666_v34  ;;  %v2704_v61 = vpack.c.b16 %v716_v48, %v715_v47 }
 0x10c   : > { %v680_v22 = vmul.f32 0.17677669, %v477_v20 }
 0x10d   : > { %v905_v58 = vunpack.c.l.b16 %v702_v44 }
 0x10e   : > { %v573_v60 = vpop.f32.mrf.mxu1 }
 0x10f   : > { %v574_v62 = vadd.f32 %v2140_v29, %v573_v60  ;;  %v2710_v6 = vpack.c.b16 %v905_v58, %v904_v57 }
 0x110   : > { %v668_v29 = vpop.f32.mrf.mxu2 }
 0x111   : > { %v696_v63 = vpack.c.bf16 %v574_v62, %v574_v62  ;;  %v669_v32 = vadd.f32 %v2142_v27, %v668_v29  ;;  %v470_v62 = vadd.f32 %v2686_v9, %v469_v24  ;;  %v688_v24 = vpack.c.bf16 %v680_v22, %v680_v22 }
 0x113   : > { %v740_v1 = vunpack.c.l.b16 %v696_v63  ;;  %v703_v39 = vpack.c.bf16 %v669_v32, %v669_v32  ;;  %v472_v63 = vadd.f32 %v2686_v9, %v471_v38  ;;  %v677_v59 = vmul.f32 0.17677669, %v470_v62 }
 0x114   : > { %v720_v26 = vunpack.c.l.b16 %v688_v24 }
 0x115   : > { %v2675_v2 = vpack.c.b16 %v740_v1, %v739_v0  ;;  %v906_v49 = vunpack.c.l.b16 %v703_v39  ;;  %v697_v1 = vpack.c.bf16 %v654_v51, %v654_v51  ;;  %v678_v7 = vmul.f32 0.17677669, %v472_v63 }
 0x116   : > { %v685_v12 = vpack.c.bf16 %v677_v59, %v677_v59 }
 0x117   : > { %971 = vrot.lane.b32.xlu2 %v2675_v2, %s2472_s19  ;;  %v768_v4 = vsel %vm745_vm0, %v2675_v2, 0  ;;  %v686_v13 = vpack.c.bf16 %v678_v7, %v678_v7 }
 0x118   : > { %774 = vmatpush.bf16.xpose.msrb.mxu3 %v768_v4  ;;  %v670_v41 = vpop.f32.mrf.mxu2  ;;  %v902_v4 = vunpack.c.l.b16 %v699_v53  ;;  %v717_v15 = vunpack.c.l.b16 %v685_v12 }
 0x119   : > { %v671_v45 = vadd.f32 %v2142_v27, %v670_v41  ;;  %v718_v16 = vunpack.c.l.b16 %v686_v13 }
 0x11a   : > { %v2715_v11 = vpack.c.b16 %v903_v5, %v902_v4 }
 0x11b   : > { %v704_v50 = vpack.c.bf16 %v671_v45, %v671_v45  ;;  %v2722_v18 = vpack.c.b16 %v718_v16, %v717_v15 }
 0x11d   : > { %v907_v60 = vunpack.c.l.b16 %v704_v50 }
 0x11f   : > { %v2708_v0 = vpack.c.b16 %v907_v60, %v906_v49 }
 0x120   : > { %775 = vmatpush.bf16.xpose.msrb.mxu3 %v765_v8  ;;  %v900_v8 = vunpack.c.l.b16 %v697_v1 }
 0x121   : > { %932 = vmatpush.bf16.msrb.mxu0 %v2708_v0 }
 0x125   : > { %933 = vmatpush.bf16.msrb.mxu0 %v2710_v6 }
 0x128   : > { %776 = vmatpush.bf16.xpose.msrb.mxu3 %v762_v14  ;;  %v2718_v14 = vpack.c.b16 %v901_v10, %v900_v8 }
 0x129   : > { %934 = vmatpush.bf16.msrb.mxu0 %v2715_v11 }
 0x12d   : > { %935 = vmatpush.bf16.msrb.mxu0 %v2718_v14 }
 0x130   : > { %777 = vmatpush.bf16.xpose.msrb.mxu3 %v759_v21  ;;  %v679_v21 = vmul.f32 0.17677669, %v475_v19 }
 0x132   : > { %v687_v23 = vpack.c.bf16 %v679_v21, %v679_v21 }
 0x134   : > { %v719_v25 = vunpack.c.l.b16 %v687_v23 }
 0x136   : > { %v2728_v27 = vpack.c.b16 %v720_v26, %v719_v25 }
 0x137   : > { %1973 = vmatmul.msk.bf16.vlgmr.msrb.gmra.mxu3 %vm745_vm0, %v2699_v28 }
 0x147   : > { %1974 = vmatmul.msk.bf16.gmra.mxu3 %vm745_vm0, %v2704_v61 }
 0x157   : > { %1975 = vmatmul.msk.bf16.gmra.mxu3 %vm745_vm0, %v2722_v18 }
 0x167   : > { %1976 = vmatmul.msk.bf16.gmra.mxu3 %vm745_vm0, %v2728_v27 }
 0x169   : > { %v968_v32 = vpop.permute.xlu1 %967 }
 0x16a   : > { %v989_v33 = vsel %vm745_vm0, %v968_v32, 0 }
 0x171   : > { %v972_v29 = vpop.permute.xlu2 %971 }
 0x172   : > { %v995_v30 = vsel %vm745_vm0, %v972_v29, 0 }
 0x173   : > { %1001 = vmatpush.bf16.xpose.msra.mxu0 %v995_v30  ;;  %2048 = vmatpush.bf16.xpose.msrb.mxu1 %v995_v30 }
 0x179   : > { %v970_v9 = vpop.permute.xlu0 %969 }
 0x17a   : > { %v992_v31 = vsel %vm745_vm0, %v970_v9, 0 }
 0x17b   : > { %1002 = vmatpush.bf16.xpose.msra.mxu0 %v992_v31  ;;  %2049 = vmatpush.bf16.xpose.msrb.mxu1 %v992_v31 }
 0x183   : > { %1003 = vmatpush.bf16.xpose.msra.mxu0 %v989_v33  ;;  %2050 = vmatpush.bf16.xpose.msrb.mxu1 %v989_v33 }
 0x1ba   : > { %v779_v34 = vpop.f32.mrf.mxu3 }
 0x1bb   : > { %v800_v35 = vsel %vm799_vm1, %v779_v34, -inf }
 0x1bc   : > { %801 = vmax.xlane.f32.xlu0 %v800_v35 }
 0x1c2   : > { %v781_v36 = vpop.f32.mrf.mxu3 }
 0x1c3   : > { %v803_v38 = vsel %vm799_vm1, %v781_v36, -inf }
 0x1c4   : > { %804 = vmax.xlane.f32.xlu0 %v803_v38 }
 0x1ca   : > { %v784_v39 = vpop.f32.mrf.mxu3 }
 0x1cb   : > { %v806_v40 = vsel %vm799_vm1, %v784_v39, -inf }
 0x1cc   : > { %807 = vmax.xlane.f32.xlu1 %v806_v40 }
 0x1d2   : > { %v786_v41 = vpop.f32.mrf.mxu3 }
 0x1d3   : > { %v809_v42 = vsel %vm799_vm1, %v786_v41, -inf }
 0x1d4   : > { %810 = vmax.xlane.f32.xlu1 %v809_v42 }
 0x1da   : > { %v789_v43 = vpop.f32.mrf.mxu3 }
 0x1db   : > { %v812_v44 = vsel %vm799_vm1, %v789_v43, -inf }
 0x1dc   : > { %813 = vmax.xlane.f32.xlu2 %v812_v44 }
 0x1e2   : > { %v791_v45 = vpop.f32.mrf.mxu3 }
 0x1e3   : > { %v815_v47 = vsel %vm799_vm1, %v791_v45, -inf }
 0x1e4   : > { %816 = vmax.xlane.f32.xlu2 %v815_v47 }
 0x1ea   : > { %v794_v48 = vpop.f32.mrf.mxu3 }
 0x1eb   : > { %v818_v49 = vsel %vm799_vm1, %v794_v48, -inf }
 0x1ec   : > { %819 = vmax.xlane.f32.xlu0 %v818_v49 }
 0x1f2   : > { %v2742_v50 = vpop.f32.mrf.mxu3 }
 0x1f3   : > { %v821_v51 = vsel %vm799_vm1, %v2742_v50, -inf }
 0x1f4   : > { %822 = vmax.xlane.f32.xlu1 %v821_v51 }
 0x22f   : > { %v802_v52 = vpop.xlane.xlu0 %801 }
 0x230   : > { %v824_v53 = vsub.f32 %v779_v34, %v802_v52 }
 0x232   : > { %v832_v54 = vmul.f32 1.442695, %v824_v53 }
 0x234   : > { %2143 = vpow2.f32 %v832_v54 }
 0x237   : > { %v805_v57 = vpop.xlane.xlu0 %804 }
 0x238   : > { %v825_v58 = vsub.f32 %v781_v36, %v805_v57 }
 0x23a   : > { %v2746_v60 = vpop.eup %2143  ;;  %v834_v62 = vmul.f32 1.442695, %v825_v58 }
 0x23b   : > { %v848_v63 = vsel %vm799_vm1, %v2746_v60, 0.0 }
 0x23c   : > { %2145 = vpow2.f32 %v834_v62  ;;  %849 = vadd.xlane.f32.xlu2 %v848_v63 }
 0x23f   : > { %v808_v1 = vpop.xlane.xlu1 %807 }
 0x240   : > { %v826_v3 = vsub.f32 %v784_v39, %v808_v1 }
 0x242   : > { %v2750_v4 = vpop.eup %2145  ;;  %v836_v5 = vmul.f32 1.442695, %v826_v3 }
 0x243   : > { %v851_v56 = vsel %vm799_vm1, %v2750_v4, 0.0 }
 0x244   : > { %2147 = vpow2.f32 %v836_v5  ;;  %852 = vadd.xlane.f32.xlu0 %v851_v56 }
 0x247   : > { %v811_v8 = vpop.xlane.xlu1 %810 }
 0x248   : > { %v827_v10 = vsub.f32 %v786_v41, %v811_v8 }
 0x24a   : > { %v2754_v59 = vpop.eup %2147  ;;  %v838_v12 = vmul.f32 1.442695, %v827_v10 }
 0x24b   : > { %v854_v7 = vsel %vm799_vm1, %v2754_v59, 0.0 }
 0x24c   : > { %855 = vadd.xlane.f32.xlu1 %v854_v7  ;;  %2149 = vpow2.f32 %v838_v12 }
 0x24f   : > { %v814_v15 = vpop.xlane.xlu2 %813 }
 0x254   : > { %965 = vrot.lane.b32.xlu2 %v2663_v37, %s2472_s19 }
 0x257   : > { %v817_v16 = vpop.xlane.xlu2 %816 }
 0x258   : > { %1185 = vrot.lane.b32.xlu0 %v2675_v2, %s2473_s29  ;;  %v829_v19 = vsub.f32 %v791_v45, %v817_v16 }
 0x25a   : > { %v842_v22 = vmul.f32 1.442695, %v829_v19 }
 0x25f   : > { %v820_v20 = vpop.xlane.xlu0 %819 }
 0x260   : > { %1399 = vrot.lane.b32.xlu0 %v2675_v2, %s2474_s9  ;;  %v2776_v2 = vpop.eup %2149  ;;  %v830_v21 = vsub.f32 %v794_v48, %v820_v20 }
 0x261   : > { %v857_v13 = vsel %vm799_vm1, %v2776_v2, 0.0 }
 0x262   : > { %v844_v24 = vmul.f32 1.442695, %v830_v21 }
 0x265   : > { %961 = vrot.lane.b32.xlu1 %v2722_v18, %s2472_s19 }
 0x267   : > { %v823_v23 = vpop.xlane.xlu1 %822 }
 0x268   : > { %1181 = vrot.lane.b32.xlu0 %v2665_v46, %s2473_s29  ;;  %v831_v25 = vsub.f32 %v2742_v50, %v823_v23 }
 0x26a   : > { %v846_v26 = vmul.f32 1.442695, %v831_v25 }
 0x26d   : > { %1397 = vrot.lane.b32.xlu1 %v2669_v55, %s2474_s9 }
 0x270   : > { %1179 = vrot.lane.b32.xlu0 %v2663_v37, %s2473_s29 }
 0x275   : > { %1395 = vrot.lane.b32.xlu1 %v2665_v46, %s2474_s9  ;;  %v828_v46 = vsub.f32 %v789_v43, %v814_v15 }
 0x277   : > { %v840_v17 = vmul.f32 1.442695, %v828_v46 }
 0x278   : > { %1385 = vrot.lane.b32.xlu0 %v2699_v28, %s2474_s9 }
 0x279   : > { %2151 = vpow2.f32 %v840_v17 }
 0x27a   : > { %2153 = vpow2.f32 %v842_v22 }
 0x27b   : > { %2155 = vpow2.f32 %v844_v24 }
 0x27c   : > { %2157 = vpow2.f32 %v846_v26 }
 0x27d   : > { %858 = vadd.xlane.f32.xlu2 %v857_v13  ;;  %1171 = vrot.lane.b32.xlu1 %v2699_v28, %s2473_s29 }
 0x280   : > { %1175 = vrot.lane.b32.xlu0 %v2722_v18, %s2473_s29 }
 0x285   : > { %1387 = vrot.lane.b32.xlu1 %v2704_v61, %s2474_s9 }
 0x295   : > { %957 = vrot.lane.b32.xlu2 %v2699_v28, %s2472_s19  ;;  %v2793_v28 = vpop.eup %2151 }
 0x296   : > { %v860_v29 = vsel %vm799_vm1, %v2793_v28, 0.0  ;;  %v2797_v30 = vpop.eup %2153 }
 0x297   : > { %v2801_v9 = vpop.eup %2155  ;;  %v863_v31 = vsel %vm799_vm1, %v2797_v30, 0.0 }
 0x298   : > { %v866_v32 = vsel %vm799_vm1, %v2801_v9, 0.0  ;;  %v2807_v33 = vpop.eup %2157 }
 0x299   : > { %v869_v34 = vsel %vm799_vm1, %v2807_v33, 0.0 }
 0x29d   : > { %959 = vrot.lane.b32.xlu2 %v2704_v61, %s2472_s19 }
 0x2a5   : > { %1183 = vrot.lane.b32.xlu2 %v2669_v55, %s2473_s29 }
 0x2aa   : > { %861 = vadd.xlane.f32.xlu0 %v860_v29 }
 0x2ad   : > { %963 = vrot.lane.b32.xlu2 %v2728_v27, %s2472_s19 }
 0x2af   : > { %v850_v55 = vpop.xlane.xlu2 %849  ;;  %864 = vadd.xlane.f32.xlu1 %v863_v31 }
 0x2b0   : > { %2159 = vrcp.f32 %v850_v55 }
 0x2b2   : > { %867 = vadd.xlane.f32.xlu0 %v866_v32 }
 0x2b5   : > { %1393 = vrot.lane.b32.xlu2 %v2663_v37, %s2474_s9 }
 0x2b6   : > { %v2160_v39 = vpop.eup %2159 }
 0x2b7   : > { %v966_v35 = vpop.permute.xlu2 %965  ;;  %v853_v36 = vpop.xlane.xlu0 %852  ;;  %870 = vadd.xlane.f32.xlu1 %v869_v34  ;;  %v880_v41 = vmul.f32 %v2160_v39, %v2746_v60 }
 0x2b8   : > { %v986_v38 = vsel %vm745_vm0, %v966_v35, 0  ;;  %2161 = vrcp.f32 %v853_v36 }
 0x2b9   : > { %1004 = vmatpush.bf16.xpose.msra.mxu0 %v986_v38  ;;  %2051 = vmatpush.bf16.xpose.msrb.mxu1 %v986_v38 }
 0x2bd   : > { %1173 = vrot.lane.b32.xlu2 %v2704_v61, %s2473_s29 }
 0x2be   : > { %v2162_v40 = vpop.eup %2161 }
 0x2bf   : > { %v881_v37 = vmul.f32 %v2162_v40, %v2750_v4  ;;  %v856_v45 = vpop.xlane.xlu1 %855 }
 0x2c0   : > { %2163 = vrcp.f32 %v856_v45 }
 0x2c1   : > { %v888_v42 = vpack.c.bf16 %v881_v37, %v880_v41 }
 0x2c3   : > { %1977 = vmatmul.msk.bf16.vlgmr.msrb.gmra.mxu0 %vm799_vm1, %v888_v42 }
 0x2c5   : > { %1389 = vrot.lane.b32.xlu2 %v2722_v18, %s2474_s9 }
 0x2c6   : > { %1391 = vrot.lane.b32.xlu0 %v2728_v27, %s2474_s9  ;;  %v2164_v53 = vpop.eup %2163 }
 0x2c7   : > { %v882_v58 = vmul.f32 %v2164_v53, %v2754_v59 }
 0x2ca   : > { %v1186_v43 = vpop.permute.xlu0 %1185 }
 0x2cb   : > { %v1209_v44 = vsel %vm745_vm0, %v1186_v43, 0 }
 0x2cc   : > { %1215 = vmatpush.bf16.xpose.msra.mxu3 %v1209_v44 }
 0x2d0   : > { %1177 = vrot.lane.b32.xlu1 %v2728_v27, %s2473_s29 }
 0x2d2   : > { %v1400_v61 = vpop.permute.xlu0 %1399 }
 0x2d3   : > { %v1423_v47 = vsel %vm745_vm0, %v1400_v61, 0 }
 0x2d4   : > { %1429 = vmatpush.bf16.xpose.msra.mxu1 %v1423_v47 }
 0x2d7   : > { %v962_v48 = vpop.permute.xlu1 %961 }
 0x2d8   : > { %1983 = vmatmul.msk.bf16.vlgmr.msrb.gmra.mxu1 %vm745_vm0, %v962_v48 }
 0x2da   : > { %v1182_v54 = vpop.permute.xlu0 %1181 }
 0x2db   : > { %v1203_v8 = vsel %vm745_vm0, %v1182_v54, 0 }
 0x2df   : > { %v1398_v49 = vpop.permute.xlu1 %1397 }
 0x2e0   : > { %v1420_v18 = vsel %vm745_vm0, %v1398_v49, 0 }
 0x2e1   : > { %1430 = vmatpush.bf16.xpose.msra.mxu1 %v1420_v18 }
 0x2e2   : > { %v1180_v1 = vpop.permute.xlu0 %1179 }
 0x2e3   : > { %v1200_v12 = vsel %vm745_vm0, %v1180_v1, 0 }
 0x2e7   : > { %v1396_v50 = vpop.permute.xlu1 %1395 }
 0x2e8   : > { %v1417_v51 = vsel %vm745_vm0, %v1396_v50, 0 }
 0x2e9   : > { %1431 = vmatpush.bf16.xpose.msra.mxu1 %v1417_v51 }
 0x2ea   : > { %v1386_v5 = vpop.permute.xlu0 %1385 }
 0x2ef   : > { %v1172_v56 = vpop.permute.xlu1 %1171 }
 0x2f0   : > { %v859_v52 = vpop.xlane.xlu2 %858 }
 0x2f1   : > { %2165 = vrcp.f32 %v859_v52 }
 0x2f2   : > { %v1176_v59 = vpop.permute.xlu0 %1175 }
 0x2f7   : > { %v2166_v27 = vpop.eup %2165  ;;  %v1388_v13 = vpop.permute.xlu1 %1387 }
 0x2f8   : > { %v958_v57 = vpop.permute.xlu2 %957  ;;  %v883_v60 = vmul.f32 %v2166_v27, %v2776_v2 }
 0x2fa   : > { %v889_v62 = vpack.c.bf16 %v883_v60, %v882_v58 }
 0x2fc   : > { %1978 = vmatmul.msk.bf16.gmra.mxu0 %vm799_vm1, %v889_v62 }
 0x300   : > { %v960_v63 = vpop.permute.xlu2 %959 }
 0x308   : > { %v1184_v3 = vpop.permute.xlu2 %1183 }
 0x309   : > { %v1206_v4 = vsel %vm745_vm0, %v1184_v3, 0 }
 0x30a   : > { %1216 = vmatpush.bf16.xpose.msra.mxu3 %v1206_v4 }
 0x310   : > { %v964_v7 = vpop.permute.xlu2 %963 }
 0x311   : > { %1984 = vmatmul.msk.bf16.gmra.mxu1 %vm745_vm0, %v964_v7 }
 0x312   : > { %1217 = vmatpush.bf16.xpose.msra.mxu3 %v1203_v8 }
 0x318   : > { %v1394_v10 = vpop.permute.xlu2 %1393 }
 0x319   : > { %v1414_v2 = vsel %vm745_vm0, %v1394_v10, 0 }
 0x31a   : > { %1218 = vmatpush.bf16.xpose.msra.mxu3 %v1200_v12  ;;  %1432 = vmatpush.bf16.xpose.msra.mxu1 %v1414_v2 }
 0x31d   : > { %v862_v15 = vpop.xlane.xlu0 %861 }
 0x31e   : > { %2167 = vrcp.f32 %v862_v15 }
 0x320   : > { %v1174_v24 = vpop.permute.xlu2 %1173 }
 0x321   : > { %1989 = vmatmul.msk.bf16.vlgmr.msra.gmra.mxu3 %vm745_vm0, %v1172_v56  ;;  %1997 = vmatmul.msk.bf16.vlgmr.msra.gmra.mxu1 %vm745_vm0, %v1386_v5 }
 0x322   : > { %v865_v46 = vpop.xlane.xlu1 %864 }
 0x323   : > { %2169 = vrcp.f32 %v865_v46 }
 0x324   : > { %v2168_v16 = vpop.eup %2167 }
 0x325   : > { %v884_v19 = vmul.f32 %v2168_v16, %v2793_v28  ;;  %v868_v23 = vpop.xlane.xlu0 %867 }
 0x329   : > { %v2170_v17 = vpop.eup %2169 }
 0x32a   : > { %v885_v20 = vmul.f32 %v2170_v17, %v2797_v30  ;;  %v871_v21 = vpop.xlane.xlu1 %870  ;;  %v1390_v30 = vpop.permute.xlu2 %1389 }
 0x32b   : > { %2171 = vrcp.f32 %v871_v21 }
 0x32c   : > { %v890_v22 = vpack.c.bf16 %v885_v20, %v884_v19  ;;  %2173 = vrcp.f32 %v868_v23 }
 0x32e   : > { %1979 = vmatmul.msk.bf16.gmra.mxu0 %vm799_vm1, %v890_v22 }
 0x331   : > { %1990 = vmatmul.msk.bf16.gmra.mxu3 %vm745_vm0, %v1174_v24  ;;  %1998 = vmatmul.msk.bf16.gmra.mxu1 %vm745_vm0, %v1388_v13  ;;  %v2172_v25 = vpop.eup %2171 }
 0x332   : > { %v2174_v26 = vpop.eup %2173  ;;  %v887_v29 = vmul.f32 %v2172_v25, %v2807_v33 }
 0x333   : > { %v886_v28 = vmul.f32 %v2174_v26, %v2801_v9 }
 0x335   : > { %v891_v31 = vpack.c.bf16 %v887_v29, %v886_v28 }
 0x338   : > { %v1392_v55 = vpop.permute.xlu0 %1391 }
 0x33e   : > { %1980 = vmatmul.msk.bf16.gmra.mxu0 %vm799_vm1, %v891_v31 }
 0x340   : > { %v2893_v18 = vpop.f32.mrf.mxu0 }
 0x341   : > { %1991 = vmatmul.msk.bf16.gmra.mxu3 %vm745_vm0, %v1176_v59  ;;  %1999 = vmatmul.msk.bf16.gmra.mxu1 %vm745_vm0, %v1390_v30 }
 0x342   : > { %v1178_v32 = vpop.permute.xlu1 %1177 }
 0x348   : > { %v2901_v52 = vpop.f32.mrf.mxu0 }
 0x34e   : > { %1981 = vmatmul.msk.bf16.vlgmr.msra.gmra.mxu0 %vm745_vm0, %v958_v57 }
 0x351   : > { %1992 = vmatmul.msk.bf16.gmra.mxu3 %vm745_vm0, %v1178_v32  ;;  %2000 = vmatmul.msk.bf16.gmra.mxu1 %vm745_vm0, %v1392_v55 }
 0x355   : > { %v1016_v34 = vpop.f32.mrf.mxu1 }
 0x356   : > { %v1038_v33 = vsel %vm799_vm1, %v1016_v34, -inf }
 0x357   : > { %1039 = vmax.xlane.f32.xlu1 %v1038_v33 }
 0x35d   : > { %v2854_v9 = vpop.f32.mrf.mxu1 }
 0x35e   : > { %1982 = vmatmul.msk.bf16.gmra.mxu0 %vm745_vm0, %v960_v63  ;;  %v1041_v35 = vsel %vm799_vm1, %v2854_v9, -inf }
 0x35f   : > { %1042 = vmax.xlane.f32.xlu0 %v1041_v35 }
 0x373   : > { %1124 = vrot.lane.b32.xlu0 %v2708_v0, %s2472_s19 }
 0x379   : > { %v2905_v27 = vpop.f32.mrf.mxu0 }
 0x381   : > { %v2911_v57 = vpop.f32.mrf.mxu0 }
 0x38e   : > { %v2861_v36 = vpop.f32.mrf.mxu1 }
 0x38f   : > { %v1044_v38 = vsel %vm799_vm1, %v2861_v36, -inf }
 0x390   : > { %1045 = vmax.xlane.f32.xlu2 %v1044_v38 }
 0x396   : > { %v2865_v39 = vpop.f32.mrf.mxu1 }
 0x397   : > { %v1047_v40 = vsel %vm799_vm1, %v2865_v39, -inf }
 0x398   : > { %1048 = vmax.xlane.f32.xlu1 %v1047_v40 }
 0x39e   : > { %v2869_v41 = vpop.f32.mrf.mxu1 }
 0x39f   : > { %v1454_v32 = vsel %vm799_vm1, %v2869_v41, -inf }
 0x3a4   : > { %v2871_v37 = vpop.f32.mrf.mxu3 }
 0x3a5   : > { %v1240_v42 = vsel %vm799_vm1, %v2871_v37, -inf }
 0x3a6   : > { %v2875_v43 = vpop.f32.mrf.mxu1  ;;  %1241 = vmax.xlane.f32.xlu1 %v1240_v42 }
 0x3a8   : > { %1122 = vrot.lane.b32.xlu2 %v2710_v6, %s2472_s19 }
 0x3ab   : > { %v2917_v63 = vpop.f32.mrf.mxu0 }
 0x3ac   : > { %v2879_v44 = vpop.f32.mrf.mxu3 }
 0x3ad   : > { %v1243_v45 = vsel %vm799_vm1, %v2879_v44, -inf }
 0x3ae   : > { %1244 = vmax.xlane.f32.xlu0 %v1243_v45  ;;  %v2883_v61 = vpop.f32.mrf.mxu1 }
 0x3af   : > { %v1460_v58 = vsel %vm799_vm1, %v2883_v61, -inf }
 0x3b0   : > { %1118 = vrot.lane.b32.xlu2 %v2718_v14, %s2472_s19 }
 0x3b3   : > { %v2923_v7 = vpop.f32.mrf.mxu0 }
 0x3b4   : > { %v2887_v47 = vpop.f32.mrf.mxu3 }
 0x3b5   : > { %v1246_v48 = vsel %vm799_vm1, %v2887_v47, -inf }
 0x3b6   : > { %1247 = vmax.xlane.f32.xlu0 %v1246_v48  ;;  %v2891_v49 = vpop.f32.mrf.mxu1 }
 0x3b7   : > { %v1463_v59 = vsel %vm799_vm1, %v2891_v49, -inf }
 0x3bb   : > { %v2937_v46 = vpop.f32.mrf.mxu0 }
 0x3bc   : > { %v2903_v53 = vpop.f32.mrf.mxu3 }
 0x3bd   : > { %v1249_v1 = vsel %vm799_vm1, %v2903_v53, -inf }
 0x3be   : > { %v2895_v50 = vpop.f32.mrf.mxu1 }
 0x3bf   : > { %1120 = vrot.lane.b32.xlu1 %v2715_v11, %s2472_s19  ;;  %v1466_v51 = vsel %vm799_vm1, %v2895_v50, -inf }
 0x3c0   : > { %1467 = vmax.xlane.f32.xlu0 %v1466_v51 }
 0x3c3   : > { %v2948_v23 = vpop.f32.mrf.mxu0 }
 0x3c4   : > { %v2907_v54 = vpop.f32.mrf.mxu3 }
 0x3c5   : > { %v1252_v20 = vsel %vm799_vm1, %v2907_v54, -inf }
 0x3c6   : > { %v2929_v12 = vpop.f32.mrf.mxu1 }
 0x3c7   : > { %v1469_v13 = vsel %vm799_vm1, %v2929_v12, -inf }
 0x3ca   : > { %v1040_v4 = vpop.xlane.xlu1 %1039 }
 0x3cb   : > { %v1054_v56 = vsub.f32 %v1016_v34, %v1040_v4  ;;  %v2959_v30 = vpop.f32.mrf.mxu0 }
 0x3cc   : > { %v2915_v60 = vpop.f32.mrf.mxu3 }
 0x3cd   : > { %v1255_v8 = vsel %vm799_vm1, %v2915_v60, -inf  ;;  %v1066_v10 = vmul.f32 1.442695, %v1054_v56 }
 0x3ce   : > { %v2946_v22 = vpop.f32.mrf.mxu1 }
 0x3cf   : > { %2175 = vpow2.f32 %v1066_v10  ;;  %v1472_v24 = vsel %vm799_vm1, %v2946_v22, -inf }
 0x3d2   : > { %v1043_v62 = vpop.xlane.xlu0 %1042 }
 0x3d3   : > { %v1055_v16 = vsub.f32 %v2854_v9, %v1043_v62  ;;  %v2970_v42 = vpop.f32.mrf.mxu0 }
 0x3d4   : > { %1338 = vrot.lane.b32.xlu0 %v2708_v0, %s2473_s29  ;;  %v2921_v3 = vpop.f32.mrf.mxu3 }
 0x3d5   : > { %v2940_v17 = vpop.eup %2175  ;;  %v1068_v19 = vmul.f32 1.442695, %v1055_v16  ;;  %v1258_v25 = vsel %vm799_vm1, %v2921_v3, -inf }
 0x3d6   : > { %v1086_v21 = vsel %vm799_vm1, %v2940_v17, 0.0  ;;  %v2964_v35 = vpop.f32.mrf.mxu1 }
 0x3d7   : > { %2177 = vpow2.f32 %v1068_v19  ;;  %v1475_v45 = vsel %vm799_vm1, %v2964_v35, -inf }
 0x3d9   : > { %1461 = vmax.xlane.f32.xlu2 %v1460_v58 }
 0x3db   : > { %v2980_v62 = vpop.f32.mrf.mxu0 }
 0x3dc   : > { %v2931_v2 = vpop.f32.mrf.mxu3  ;;  %v1032_v56 = vsel %vm799_vm1, %v2980_v62, -inf }
 0x3dd   : > { %v1261_v15 = vsel %vm799_vm1, %v2931_v2, -inf  ;;  %v2954_v26 = vpop.eup %2177 }
 0x3de   : > { %v1089_v31 = vsel %vm799_vm1, %v2954_v26, 0.0 }
 0x3e1   : > { %1250 = vmax.xlane.f32.xlu2 %v1249_v1 }
 0x3e5   : > { %v1125_v5 = vpop.permute.xlu0 %1124 }
 0x3e6   : > { %1146 = vmatpush.bf16.msrb.mxu2 %v1125_v5  ;;  %v1457_v5 = vsel %vm799_vm1, %v2875_v43, -inf }
 0x3e9   : > { %1256 = vmax.xlane.f32.xlu2 %v1255_v8  ;;  %1464 = vmax.xlane.f32.xlu1 %v1463_v59 }
 0x3f1   : > { %1470 = vmax.xlane.f32.xlu1 %v1469_v13  ;;  %1262 = vmax.xlane.f32.xlu2 %v1261_v15  ;;  %v2990_v13 = vpop.f32.mrf.mxu0 }
 0x3f2   : > { %v1035_v16 = vsel %vm799_vm1, %v2990_v13, -inf }
 0x3f9   : > { %1253 = vmax.xlane.f32.xlu1 %v1252_v20  ;;  %1087 = vadd.xlane.f32.xlu2 %v1086_v21  ;;  %v1029_v20 = vsel %vm799_vm1, %v2970_v42, -inf }
 0x3fe   : > { %1473 = vmax.xlane.f32.xlu0 %v1472_v24 }
 0x401   : > { %1259 = vmax.xlane.f32.xlu1 %v1258_v25 }
 0x403   : > { %v1046_v29 = vpop.xlane.xlu2 %1045 }
 0x404   : > { %v1056_v28 = vsub.f32 %v2861_v36, %v1046_v29 }
 0x406   : > { %v1070_v55 = vmul.f32 1.442695, %v1056_v28  ;;  %1090 = vadd.xlane.f32.xlu0 %v1089_v31 }
 0x408   : > { %2179 = vpow2.f32 %v1070_v55 }
 0x409   : > { %1455 = vmax.xlane.f32.xlu1 %v1454_v32 }
 0x40b   : > { %v1123_v34 = vpop.permute.xlu2 %1122  ;;  %v1049_v33 = vpop.xlane.xlu1 %1048 }
 0x40c   : > { %v1057_v9 = vsub.f32 %v2865_v39, %v1049_v33  ;;  %1147 = vmatpush.bf16.msrb.mxu2 %v1123_v34  ;;  %v1026_v39 = vsel %vm799_vm1, %v2959_v30, -inf }
 0x40e   : > { %v2966_v36 = vpop.eup %2179  ;;  %v1072_v38 = vmul.f32 1.442695, %v1057_v9 }
 0x40f   : > { %v1092_v40 = vsel %vm799_vm1, %v2966_v36, 0.0 }
 0x410   : > { %2181 = vpow2.f32 %v1072_v38  ;;  %1093 = vadd.xlane.f32.xlu2 %v1092_v40 }
 0x411   : > { %1476 = vmax.xlane.f32.xlu1 %v1475_v45 }
 0x413   : > { %v1119_v24 = vpop.permute.xlu2 %1118 }
 0x416   : > { %v2974_v48 = vpop.eup %2181 }
 0x417   : > { %v1095_v51 = vsel %vm799_vm1, %v2974_v48, 0.0 }
 0x418   : > { %1027 = vmax.xlane.f32.xlu2 %v1026_v39  ;;  %1096 = vadd.xlane.f32.xlu0 %v1095_v51 }
 0x419   : > { %v1242_v58 = vpop.xlane.xlu1 %1241 }
 0x41a   : > { %v1264_v1 = vsub.f32 %v2871_v37, %v1242_v58 }
 0x41c   : > { %v1272_v4 = vmul.f32 1.442695, %v1264_v1 }
 0x41e   : > { %2183 = vpow2.f32 %v1272_v4 }
 0x420   : > { %1458 = vmax.xlane.f32.xlu2 %v1457_v5  ;;  %1033 = vmax.xlane.f32.xlu0 %v1032_v56 }
 0x421   : > { %v1245_v8 = vpop.xlane.xlu0 %1244 }
 0x422   : > { %v1265_v59 = vsub.f32 %v2879_v44, %v1245_v8 }
 0x424   : > { %v2988_v10 = vpop.eup %2183  ;;  %v1274_v15 = vmul.f32 1.442695, %v1265_v59 }
 0x425   : > { %v1288_v37 = vsel %vm799_vm1, %v2988_v10, 0.0 }
 0x426   : > { %2185 = vpow2.f32 %v1274_v15  ;;  %1289 = vadd.xlane.f32.xlu1 %v1288_v37 }
 0x428   : > { %1036 = vmax.xlane.f32.xlu2 %v1035_v16 }
 0x429   : > { %v3004_v25 = vpop.xlane.xlu0 %1247 }
 0x42c   : > { %v2996_v19 = vpop.eup %2185 }
 0x42d   : > { %v1291_v44 = vsel %vm799_vm1, %v2996_v19, 0.0 }
 0x42e   : > { %1030 = vmax.xlane.f32.xlu1 %v1029_v20 }
 0x430   : > { %1292 = vadd.xlane.f32.xlu2 %v1291_v44 }
 0x431   : > { %v1121_v21 = vpop.permute.xlu1 %1120 }
 0x432   : > { %1148 = vmatpush.bf16.msrb.mxu2 %v1121_v21 }
 0x433   : > { %v3008_v29 = vpop.xlane.xlu0 %1467 }
 0x434   : > { %1334 = vrot.lane.b32.xlu0 %v2715_v11, %s2473_s29 }
 0x436   : > { %1149 = vmatpush.bf16.msrb.mxu2 %v1119_v24 }
 0x43c   : > { %1332 = vrot.lane.b32.xlu0 %v2718_v14, %s2473_s29 }
 0x446   : > { %v1339_v28 = vpop.permute.xlu0 %1338 }
 0x447   : > { %1360 = vmatpush.bf16.msrb.mxu0 %v1339_v28 }
 0x44c   : > { %v1462_v31 = vpop.xlane.xlu2 %1461 }
 0x44d   : > { %v1480_v55 = vsub.f32 %v2883_v61, %v1462_v31 }
 0x44f   : > { %v1490_v34 = vmul.f32 1.442695, %v1480_v55 }
 0x451   : > { %2187 = vpow2.f32 %v1490_v34 }
 0x454   : > { %v1251_v32 = vpop.xlane.xlu2 %1250 }
 0x457   : > { %v3015_v38 = vpop.eup %2187 }
 0x458   : > { %v1508_v40 = vsel %vm799_vm1, %v3015_v38, 0.0 }
 0x45c   : > { %v3011_v33 = vpop.xlane.xlu1 %1464  ;;  %v3013_v9 = vpop.xlane.xlu2 %1256 }
 0x464   : > { %v3019_v45 = vpop.xlane.xlu1 %1470  ;;  %v3021_v39 = vpop.xlane.xlu2 %1262 }
 0x466   : > { %1509 = vadd.xlane.f32.xlu0 %v1508_v40 }
 0x46c   : > { %v3025_v61 = vpop.xlane.xlu1 %1253  ;;  %v1088_v58 = vpop.xlane.xlu2 %1087 }
 0x46d   : > { %2189 = vrcp.f32 %v1088_v58 }
 0x471   : > { %v3023_v51 = vpop.xlane.xlu0 %1473 }
 0x473   : > { %v2190_v5 = vpop.eup %2189 }
 0x474   : > { %v3027_v4 = vpop.xlane.xlu1 %1259  ;;  %v3030_v8 = vmul.f32 %v2190_v5, %v2940_v17 }
 0x479   : > { %v1091_v1 = vpop.xlane.xlu0 %1090 }
 0x47a   : > { %2191 = vrcp.f32 %v1091_v1 }
 0x47c   : > { %v3037_v16 = vpop.xlane.xlu1 %1455 }
 0x480   : > { %v2192_v56 = vpop.eup %2191 }
 0x481   : > { %v3033_v59 = vmul.f32 %v2192_v56, %v2954_v26 }
 0x483   : > { %v1094_v15 = vpop.xlane.xlu2 %1093  ;;  %v1116_v37 = vpack.c.bf16 %v3033_v59, %v3030_v8 }
 0x484   : > { %2193 = vrcp.f32 %v1094_v15  ;;  %v3040_v17 = vpop.xlane.xlu1 %1476 }
 0x48a   : > { %v2194_v28 = vpop.eup %2193 }
 0x48b   : > { %v1028_v20 = vpop.xlane.xlu2 %1027  ;;  %v1097_v44 = vpop.xlane.xlu0 %1096  ;;  %v3043_v34 = vmul.f32 %v2194_v28, %v2966_v36 }
 0x48c   : > { %v1050_v21 = vsub.f32 %v2959_v30, %v1028_v20  ;;  %2195 = vrcp.f32 %v1097_v44 }
 0x48e   : > { %v1058_v24 = vmul.f32 1.442695, %v1050_v21 }
 0x490   : > { %2197 = vpow2.f32 %v1058_v24 }
 0x492   : > { %v2196_v31 = vpop.eup %2195 }
 0x493   : > { %v1459_v26 = vpop.xlane.xlu2 %1458  ;;  %v1034_v55 = vpop.xlane.xlu0 %1033  ;;  %v3046_v40 = vmul.f32 %v2196_v31, %v2974_v48 }
 0x494   : > { %v1052_v58 = vsub.f32 %v2980_v62, %v1034_v55  ;;  %v1267_v62 = vsub.f32 %v2903_v53, %v1251_v32 }
 0x495   : > { %v1117_v30 = vpack.c.bf16 %v3046_v40, %v3043_v34 }
 0x496   : > { %v3051_v1 = vpop.eup %2197  ;;  %v1062_v5 = vmul.f32 1.442695, %v1052_v58  ;;  %v1278_v31 = vmul.f32 1.442695, %v1267_v62  ;;  %v1268_v62 = vsub.f32 %v2907_v54, %v3025_v61 }
 0x497   : > { %v1074_v56 = vsel %vm799_vm1, %v3051_v1, 0.0 }
 0x498   : > { %1075 = vadd.xlane.f32.xlu2 %v1074_v56  ;;  %2199 = vpow2.f32 %v1062_v5  ;;  %v1266_v56 = vsub.f32 %v2887_v47, %v3004_v25  ;;  %v1280_v25 = vmul.f32 1.442695, %v1268_v62 }
 0x499   : > { %v3055_v15 = vpop.xlane.xlu1 %1289 }
 0x49b   : > { %v1037_v36 = vpop.xlane.xlu2 %1036 }
 0x49c   : > { %v1053_v20 = vsub.f32 %v2990_v13, %v1037_v36  ;;  %v1276_v36 = vmul.f32 1.442695, %v1266_v56 }
 0x49e   : > { %v1064_v48 = vmul.f32 1.442695, %v1053_v20  ;;  %v3058_v44 = vpop.eup %2199 }
 0x49f   : > { %v1080_v21 = vsel %vm799_vm1, %v3058_v44, 0.0 }
 0x4a0   : > { %2201 = vpow2.f32 %v1064_v48  ;;  %1081 = vadd.xlane.f32.xlu0 %v1080_v21 }
 0x4a1   : > { %v1031_v24 = vpop.xlane.xlu1 %1030 }
 0x4a2   : > { %v1051_v28 = vsub.f32 %v2970_v42, %v1031_v24  ;;  %v1479_v24 = vsub.f32 %v2875_v43, %v1459_v26 }
 0x4a3   : > { %v1293_v62 = vpop.xlane.xlu2 %1292 }
 0x4a4   : > { %v1060_v55 = vmul.f32 1.442695, %v1051_v28 }
 0x4a6   : > { %v3064_v58 = vpop.eup %2201  ;;  %2203 = vpow2.f32 %v1060_v55 }
 0x4a7   : > { %2205 = vpow2.f32 %v1278_v31  ;;  %v1083_v13 = vsel %vm799_vm1, %v3064_v58, 0.0 }
 0x4a8   : > { %1084 = vadd.xlane.f32.xlu0 %v1083_v13  ;;  %2207 = vpow2.f32 %v1276_v36  ;;  %v1271_v36 = vsub.f32 %v2931_v2, %v3021_v39 }
 0x4ac   : > { %v3068_v5 = vpop.eup %2203 }
 0x4ad   : > { %v3070_v53 = vpop.eup %2205  ;;  %v1077_v32 = vsel %vm799_vm1, %v3068_v5, 0.0 }
 0x4ae   : > { %1078 = vadd.xlane.f32.xlu1 %v1077_v32  ;;  %v1297_v42 = vsel %vm799_vm1, %v3070_v53, 0.0  ;;  %v3088_v48 = vpop.eup %2207 }
 0x4af   : > { %v1294_v47 = vsel %vm799_vm1, %v3088_v48, 0.0 }
 0x4b0   : > { %1552 = vrot.lane.b32.xlu2 %v2708_v0, %s2474_s9  ;;  %1298 = vadd.xlane.f32.xlu0 %v1297_v42  ;;  %v1482_v0 = vsub.f32 %v2895_v50, %v3008_v29 }
 0x4b2   : > { %v1494_v20 = vmul.f32 1.442695, %v1482_v0 }
 0x4b4   : > { %2209 = vpow2.f32 %v1494_v20  ;;  %v1286_v20 = vmul.f32 1.442695, %v1271_v36 }
 0x4b5   : > { %2211 = vpow2.f32 %v1280_v25 }
 0x4b8   : > { %1550 = vrot.lane.b32.xlu2 %v2710_v6, %s2474_s9 }
 0x4ba   : > { %v3098_v29 = vpop.eup %2209 }
 0x4bb   : > { %v1514_v54 = vsel %vm799_vm1, %v3098_v29, 0.0 }
 0x4c4   : > { %1546 = vrot.lane.b32.xlu0 %v2718_v14, %s2474_s9  ;;  %v1481_v14 = vsub.f32 %v2891_v49, %v3011_v33  ;;  %v1484_v49 = vsub.f32 %v2946_v22, %v3023_v51  ;;  %v3105_v33 = vpop.eup %2211  ;;  %v1485_v22 = vsub.f32 %v2964_v35, %v3040_v17  ;;  %v1270_v35 = vsub.f32 %v2921_v3, %v3027_v4 }
 0x4c5   : > { %v1300_v43 = vsel %vm799_vm1, %v3105_v33, 0.0  ;;  %v1478_v4 = vsub.f32 %v2869_v41, %v3037_v16 }
 0x4c6   : > { %v1492_v21 = vmul.f32 1.442695, %v1481_v14  ;;  %v1500_v55 = vmul.f32 1.442695, %v1485_v22  ;;  %v1284_v42 = vmul.f32 1.442695, %v1270_v35  ;;  %v1335_v14 = vpop.permute.xlu0 %1334 }
 0x4c7   : > { %1336 = vrot.lane.b32.xlu1 %v2710_v6, %s2473_s29  ;;  %v1483_v6 = vsub.f32 %v2929_v12, %v3019_v45  ;;  %v1488_v12 = vmul.f32 1.442695, %v1479_v24  ;;  %v1498_v45 = vmul.f32 1.442695, %v1484_v49  ;;  %v1486_v2 = vmul.f32 1.442695, %v1478_v4 }
 0x4c8   : > { %2213 = vpow2.f32 %v1492_v21 }
 0x4c9   : > { %v1496_v50 = vmul.f32 1.442695, %v1483_v6 }
 0x4cb   : > { %2215 = vpow2.f32 %v1496_v50 }
 0x4cc   : > { %2217 = vpow2.f32 %v1488_v12  ;;  %v1269_v12 = vsub.f32 %v2915_v60, %v3013_v9 }
 0x4cd   : > { %2219 = vpow2.f32 %v1498_v45 }
 0x4ce   : > { %v3107_v61 = vpop.eup %2213  ;;  %2221 = vpow2.f32 %v1500_v55  ;;  %v1333_v21 = vpop.permute.xlu0 %1332 }
 0x4cf   : > { %v1511_v26 = vsel %vm799_vm1, %v3107_v61, 0.0  ;;  %2223 = vpow2.f32 %v1284_v42 }
 0x4d0   : > { %2225 = vpow2.f32 %v1286_v20 }
 0x4d1   : > { %v3109_v28 = vpop.eup %2215  ;;  %2227 = vpow2.f32 %v1486_v2 }
 0x4d2   : > { %v1517_v51 = vsel %vm799_vm1, %v3109_v28, 0.0  ;;  %v3119_v31 = vpop.eup %2217 }
 0x4d3   : > { %v3121_v13 = vpop.eup %2219  ;;  %v1505_v32 = vsel %vm799_vm1, %v3119_v31, 0.0 }
 0x4d4   : > { %v1520_v17 = vsel %vm799_vm1, %v3121_v13, 0.0  ;;  %v3129_v56 = vpop.eup %2221 }
 0x4d5   : > { %v1523_v0 = vsel %vm799_vm1, %v3129_v56, 0.0  ;;  %v3135_v3 = vpop.eup %2223 }
 0x4d6   : > { %v1306_v6 = vsel %vm799_vm1, %v3135_v3, 0.0 }
 0x4d9   : > { %v1510_v24 = vpop.xlane.xlu0 %1509 }
 0x4e1   : > { %1295 = vadd.xlane.f32.xlu2 %v1294_v47  ;;  %v3143_v47 = vpop.eup %2225 }
 0x4e2   : > { %v1309_v25 = vsel %vm799_vm1, %v3143_v47, 0.0  ;;  %v3147_v41 = vpop.eup %2227 }
 0x4e3   : > { %v1502_v16 = vsel %vm799_vm1, %v3147_v41, 0.0 }
 0x4e9   : > { %1515 = vadd.xlane.f32.xlu2 %v1514_v54 }
 0x4ee   : > { %1301 = vadd.xlane.f32.xlu0 %v1300_v43  ;;  %v1282_v43 = vmul.f32 1.442695, %v1269_v12 }
 0x4f1   : > { %1518 = vadd.xlane.f32.xlu2 %v1517_v51  ;;  %1512 = vadd.xlane.f32.xlu1 %v1511_v26 }
 0x4f6   : > { %1506 = vadd.xlane.f32.xlu0 %v1505_v32 }
 0x4f9   : > { %1521 = vadd.xlane.f32.xlu2 %v1520_v17 }
 0x501   : > { %1524 = vadd.xlane.f32.xlu2 %v1523_v0 }
 0x509   : > { %1307 = vadd.xlane.f32.xlu2 %v1306_v6 }
 0x50a   : > { %1548 = vrot.lane.b32.xlu1 %v2715_v11, %s2474_s9 }
 0x50b   : > { %v1076_v39 = vpop.xlane.xlu2 %1075 }
 0x50c   : > { %2229 = vrcp.f32 %v1076_v39 }
 0x511   : > { %1310 = vadd.xlane.f32.xlu2 %v1309_v25 }
 0x512   : > { %v2230_v45 = vpop.eup %2229 }
 0x513   : > { %v1553_v50 = vpop.permute.xlu2 %1552  ;;  %v1082_v49 = vpop.xlane.xlu0 %1081  ;;  %v1106_v51 = vmul.f32 %v2230_v45, %v3051_v1 }
 0x514   : > { %1574 = vmatpush.bf16.msrb.mxu1 %v1553_v50  ;;  %2052 = vmatpush.bf16.msra.mxu2 %v1553_v50 }
 0x519   : > { %1503 = vadd.xlane.f32.xlu2 %v1502_v16 }
 0x51b   : > { %v1551_v11 = vpop.permute.xlu2 %1550  ;;  %v1085_v55 = vpop.xlane.xlu0 %1084 }
 0x51c   : > { %1575 = vmatpush.bf16.msrb.mxu1 %v1551_v11  ;;  %2053 = vmatpush.bf16.msra.mxu2 %v1551_v11 }
 0x521   : > { %v1079_v54 = vpop.xlane.xlu1 %1078 }
 0x522   : > { %2231 = vrcp.f32 %v1079_v54 }
 0x523   : > { %2233 = vpow2.f32 %v1282_v43 }
 0x524   : > { %2235 = vrcp.f32 %v1085_v55 }
 0x525   : > { %2237 = vrcp.f32 %v1082_v49 }
 0x526   : > { %2239 = vrcp.f32 %v1293_v62 }
 0x527   : > { %2241 = vrcp.f32 %v3055_v15  ;;  %v1299_v15 = vpop.xlane.xlu0 %1298 }
 0x528   : > { %v2232_v22 = vpop.eup %2231  ;;  %2243 = vrcp.f32 %v1299_v15 }
 0x529   : > { %v1107_v26 = vmul.f32 %v2232_v22, %v3068_v5  ;;  %v3156_v35 = vpop.eup %2233 }
 0x52a   : > { %v1303_v60 = vsel %vm799_vm1, %v3156_v35, 0.0  ;;  %v2236_v9 = vpop.eup %2235 }
 0x52b   : > { %v1114_v32 = vpack.c.bf16 %v1107_v26, %v1106_v51  ;;  %v2238_v17 = vpop.eup %2237  ;;  %v1109_v1 = vmul.f32 %v2236_v9, %v3064_v58 }
 0x52c   : > { %v1108_v42 = vmul.f32 %v2238_v17, %v3058_v44  ;;  %v2240_v0 = vpop.eup %2239 }
 0x52d   : > { %1985 = vmatmul.msk.bf16.vlgmr.msrb.gmra.mxu2 %vm799_vm1, %v1114_v32  ;;  %v2242_v20 = vpop.eup %2241  ;;  %v1321_v4 = vmul.f32 %v2240_v0, %v2996_v19 }
 0x52e   : > { %v1115_v36 = vpack.c.bf16 %v1109_v1, %v1108_v42  ;;  %v1320_v6 = vmul.f32 %v2242_v20, %v2988_v10  ;;  %v2244_v58 = vpop.eup %2243 }
 0x52f   : > { %v1323_v10 = vmul.f32 %v2244_v58, %v3070_v53 }
 0x530   : > { %v1328_v62 = vpack.c.bf16 %v1321_v4, %v1320_v6 }
 0x534   : > { %1304 = vadd.xlane.f32.xlu1 %v1303_v60 }
 0x539   : > { %v1337_v5 = vpop.permute.xlu1 %1336 }
 0x53a   : > { %1361 = vmatpush.bf16.msrb.mxu0 %v1337_v5 }
 0x53d   : > { %1986 = vmatmul.msk.bf16.gmra.mxu2 %vm799_vm1, %v1115_v36 }
 0x53e   : > { %1362 = vmatpush.bf16.msrb.mxu0 %v1335_v14 }
 0x542   : > { %1363 = vmatpush.bf16.msrb.mxu0 %v1333_v21  ;;  %v1547_v21 = vpop.permute.xlu0 %1546 }
 0x545   : > { %1993 = vmatmul.msk.bf16.vlgmr.msrb.gmra.mxu0 %vm799_vm1, %v1328_v62 }
 0x54d   : > { %1987 = vmatmul.msk.bf16.gmra.mxu2 %vm799_vm1, %v1116_v37 }
 0x554   : > { %v1296_v44 = vpop.xlane.xlu2 %1295 }
 0x555   : > { %2245 = vrcp.f32 %v1296_v44 }
 0x55b   : > { %v2246_v2 = vpop.eup %2245 }
 0x55c   : > { %v1516_v14 = vpop.xlane.xlu2 %1515  ;;  %v1322_v19 = vmul.f32 %v2246_v2, %v3088_v48 }
 0x55d   : > { %1988 = vmatmul.msk.bf16.gmra.mxu2 %vm799_vm1, %v1117_v30 }
 0x55e   : > { %v1329_v39 = vpack.c.bf16 %v1323_v10, %v1322_v19 }
 0x560   : > { %1994 = vmatmul.msk.bf16.gmra.mxu0 %vm799_vm1, %v1329_v39 }
 0x561   : > { %v1302_v53 = vpop.xlane.xlu0 %1301 }
 0x564   : > { %v1519_v8 = vpop.xlane.xlu2 %1518  ;;  %v1513_v37 = vpop.xlane.xlu1 %1512 }
 0x565   : > { %2247 = vrcp.f32 %v1513_v37 }
 0x566   : > { %2249 = vrcp.f32 %v1510_v24 }
 0x567   : > { %2251 = vrcp.f32 %v1519_v8 }
 0x568   : > { %2253 = vrcp.f32 %v1516_v14 }
 0x569   : > { %v1507_v24 = vpop.xlane.xlu0 %1506 }
 0x56a   : > { %2255 = vrcp.f32 %v1507_v24 }
 0x56b   : > { %v2248_v50 = vpop.eup %2247 }
 0x56c   : > { %v1522_v59 = vpop.xlane.xlu2 %1521  ;;  %v2250_v11 = vpop.eup %2249  ;;  %v1537_v34 = vmul.f32 %v2248_v50, %v3107_v61 }
 0x56d   : > { %v1536_v40 = vmul.f32 %v2250_v11, %v3015_v38  ;;  %v2252_v54 = vpop.eup %2251 }
 0x56e   : > { %v2254_v45 = vpop.eup %2253  ;;  %v1539_v43 = vmul.f32 %v2252_v54, %v3109_v28 }
 0x56f   : > { %v1543_v30 = vpack.c.bf16 %v1537_v34, %v1536_v40  ;;  %v1538_v61 = vmul.f32 %v2254_v45, %v3098_v29 }
 0x570   : > { %v2256_v22 = vpop.eup %2255 }
 0x571   : > { %v1544_v38 = vpack.c.bf16 %v1539_v43, %v1538_v61  ;;  %v1535_v26 = vmul.f32 %v2256_v22, %v3119_v31 }
 0x574   : > { %v1525_v25 = vpop.xlane.xlu2 %1524 }
 0x57c   : > { %v1308_v16 = vpop.xlane.xlu2 %1307  ;;  %v1549_v48 = vpop.permute.xlu1 %1548 }
 0x57d   : > { %1576 = vmatpush.bf16.msrb.mxu1 %v1549_v48  ;;  %2054 = vmatpush.bf16.msra.mxu2 %v1549_v48 }
 0x581   : > { %1577 = vmatpush.bf16.msrb.mxu1 %v1547_v21  ;;  %2055 = vmatpush.bf16.msra.mxu2 %v1547_v21 }
 0x584   : > { %v1311_v49 = vpop.xlane.xlu2 %1310  ;;  %2002 = vmatmul.msk.bf16.vlgmr.msra.gmra.mxu2 %vm799_vm1, %v1543_v30 }
 0x58c   : > { %v1504_v12 = vpop.xlane.xlu2 %1503 }
 0x58d   : > { %2257 = vrcp.f32 %v1504_v12 }
 0x58e   : > { %2259 = vrcp.f32 %v1525_v25 }
 0x58f   : > { %2261 = vrcp.f32 %v1522_v59 }
 0x590   : > { %2263 = vrcp.f32 %v1302_v53 }
 0x593   : > { %v2258_v51 = vpop.eup %2257 }
 0x594   : > { %v1534_v55 = vmul.f32 %v2258_v51, %v3147_v41  ;;  %2003 = vmatmul.msk.bf16.gmra.mxu2 %vm799_vm1, %v1544_v38  ;;  %v2260_v60 = vpop.eup %2259 }
 0x595   : > { %v2262_v9 = vpop.eup %2261  ;;  %v1541_v28 = vmul.f32 %v2260_v60, %v3129_v56 }
 0x596   : > { %v1542_v32 = vpack.c.bf16 %v1535_v26, %v1534_v55  ;;  %v1540_v29 = vmul.f32 %v2262_v9, %v3121_v13  ;;  %v2264_v41 = vpop.eup %2263 }
 0x597   : > { %v1324_v5 = vmul.f32 %v2264_v41, %v3105_v33 }
 0x598   : > { %2001 = vmatmul.msk.bf16.vlgmr.msrb.gmra.mxu1 %vm799_vm1, %v1542_v32  ;;  %v1545_v17 = vpack.c.bf16 %v1541_v28, %v1540_v29 }
 0x5a4   : > { %2004 = vmatmul.msk.bf16.gmra.mxu2 %vm799_vm1, %v1545_v17 }
 0x5a7   : > { %v1305_v31 = vpop.xlane.xlu1 %1304 }
 0x5a8   : > { %2265 = vrcp.f32 %v1305_v31 }
 0x5a9   : > { %2267 = vrcp.f32 %v1311_v49 }
 0x5aa   : > { %2269 = vrcp.f32 %v1308_v16 }
 0x5ae   : > { %v2266_v1 = vpop.eup %2265 }
 0x5af   : > { %v1325_v42 = vmul.f32 %v2266_v1, %v3156_v35  ;;  %v2268_v56 = vpop.eup %2267 }
 0x5b0   : > { %v2270_v0 = vpop.eup %2269  ;;  %v1327_v13 = vmul.f32 %v2268_v56, %v3143_v47  ;;  %v1151_v15 = vpop.f32.mrf.mxu2 }
 0x5b1   : > { %v1330_v36 = vpack.c.bf16 %v1325_v42, %v1324_v5  ;;  %v1326_v20 = vmul.f32 %v2270_v0, %v3135_v3 }
 0x5b3   : > { %1995 = vmatmul.msk.bf16.gmra.mxu0 %vm799_vm1, %v1330_v36  ;;  %v1331_v4 = vpack.c.bf16 %v1327_v13, %v1326_v20 }
 0x5b8   : > { %v1153_v44 = vpop.f32.mrf.mxu2 }
 0x5c0   : > { %v1156_v47 = vpop.f32.mrf.mxu2 }
 0x5c2   : > { %v1365_v6 = vpop.f32.mrf.mxu0 }
 0x5c3   : > { %1639 = vrot.lane.b32.xlu1 %v1365_v6, %s2473_s29  ;;  %1996 = vmatmul.msk.bf16.gmra.mxu0 %vm799_vm1, %v1331_v4 }
 0x5c8   : > { %v1158_v58 = vpop.f32.mrf.mxu2 }
 0x5ca   : > { %v1367_v33 = vpop.f32.mrf.mxu0 }
 0x5cb   : > { %1641 = vrot.lane.b32.xlu2 %v1367_v33, %s2473_s29 }
 0x5d0   : > { %v1161_v3 = vpop.f32.mrf.mxu2 }
 0x5d8   : > { %v1163_v2 = vpop.f32.mrf.mxu2 }
 0x5dd   : > { %v1370_v35 = vpop.f32.mrf.mxu0 }
 0x5de   : > { %1643 = vrot.lane.b32.xlu0 %v1370_v35, %s2473_s29 }
 0x5e0   : > { %v1166_v14 = vpop.f32.mrf.mxu2 }
 0x5e5   : > { %v1372_v62 = vpop.f32.mrf.mxu0 }
 0x5e6   : > { %1645 = vrot.lane.b32.xlu1 %v1372_v62, %s2473_s29 }
 0x5e8   : > { %v1168_v19 = vpop.f32.mrf.mxu2 }
 0x607   : > { %v1584_v39 = vpop.f32.mrf.mxu2 }
 0x60f   : > { %v1586_v37 = vpop.f32.mrf.mxu2 }
 0x615   : > { %v1579_v59 = vpop.f32.mrf.mxu1 }
 0x617   : > { %v1589_v16 = vpop.f32.mrf.mxu2 }
 0x61d   : > { %v1581_v21 = vpop.f32.mrf.mxu1 }
 0x61f   : > { %v1591_v48 = vpop.f32.mrf.mxu2 }
 0x625   : > { %v1642_v34 = vpop.permute.xlu2 %1641 }
 0x627   : > { %v1594_v11 = vpop.f32.mrf.mxu2 }
 0x62f   : > { %v1596_v53 = vpop.f32.mrf.mxu2 }
 0x630   : > { %v1375_v10 = vpop.f32.mrf.mxu0 }
 0x631   : > { %1647 = vrot.lane.b32.xlu2 %v1375_v10, %s2473_s29 }
 0x635   : > { %v1640_v30 = vpop.permute.xlu1 %1639 }
 0x638   : > { %v1377_v8 = vpop.f32.mrf.mxu0 }
 0x639   : > { %1649 = vrot.lane.b32.xlu0 %v1377_v8, %s2473_s29 }
 0x640   : > { %v1380_v25 = vpop.f32.mrf.mxu0 }
 0x641   : > { %1671 = vrot.lane.b32.xlu0 %v1579_v59, %s2472_s19  ;;  %1651 = vrot.lane.b32.xlu1 %v1380_v25, %s2473_s29 }
 0x648   : > { %v1382_v50 = vpop.f32.mrf.mxu0 }
 0x649   : > { %1611 = vrot.lane.b32.xlu0 %v1156_v47, %s2474_s9  ;;  %1673 = vrot.lane.b32.xlu1 %v1581_v21, %s2472_s19 }
 0x64a   : > { %1653 = vrot.lane.b32.xlu2 %v1382_v50, %s2473_s29  ;;  %s2411_s29 = scalar_lea.hbm %s3307_s7, 128 }
 0x64b   : > { %p2413_p9 = scmp.lt.s32.totalorder %s2411_s29, %s2407_s14 }
 0x64d   : > { %p2414_p2 = por %p2413_p9, %p2412_p11 }
 0x64f   : > { %p2415_p10 = pnand %p2414_p2, %p2410_p8 }
 0x650   : > { %v1644_v49 = vpop.permute.xlu0 %1643 }
 0x651   : > { %1615 = vrot.lane.b32.xlu0 %v1161_v3, %s2474_s9  ;;  %1609 = vrot.lane.b32.xlu1 %v1153_v44, %s2474_s9 }
 0x652   : > { %1607 = vrot.lane.b32.xlu2 %v1151_v15, %s2474_s9 }
 0x658   : > { %v1646_v54 = vpop.permute.xlu1 %1645 }
 0x659   : > { %1621 = vrot.lane.b32.xlu0 %v1168_v19, %s2474_s9  ;;  %1617 = vrot.lane.b32.xlu1 %v1163_v2, %s2474_s9 }
 0x65a   : > { %1613 = vrot.lane.b32.xlu2 %v1158_v58, %s2474_s9 }
 0x661   : > { %1677 = vrot.lane.b32.xlu0 %v1586_v37, %s2472_s19  ;;  %1679 = vrot.lane.b32.xlu1 %v1589_v16, %s2472_s19 }
 0x662   : > { %1619 = vrot.lane.b32.xlu2 %v1166_v14, %s2474_s9 }
 0x669   : > { %1683 = vrot.lane.b32.xlu0 %v1594_v11, %s2472_s19  ;;  %1685 = vrot.lane.b32.xlu1 %v1596_v53, %s2472_s19 }
 0x66a   : > { %1675 = vrot.lane.b32.xlu2 %v1584_v39, %s2472_s19 }
 0x672   : > { %1681 = vrot.lane.b32.xlu2 %v1591_v48, %s2472_s19  ;;  %s1729_s19 = scalar_lea.sflag [#allocation4], %s2638_s15 }
 0x68b   : > { %v1648_v40 = vpop.permute.xlu2 %1647 }
 0x6a4   : > { %v1654_v24 = vpop.permute.xlu2 %1653 }
 0x6ab   : > { %v1650_v12 = vpop.permute.xlu0 %1649 }
 0x6ac   : > { %v1608_v45 = vpop.permute.xlu2 %1607 }
 0x6ad   : > { %v1695_v43 = vsel %vm745_vm0, %v2893_v18, %v1608_v45 }
 0x6ae   : > { %v1703_v22 = vsel %vm799_vm1, %v1695_v43, %v1640_v30 }
 0x6b3   : > { %v1672_v61 = vpop.permute.xlu0 %1671  ;;  %v1652_v38 = vpop.permute.xlu1 %1651 }
 0x6b4   : > { %v1712_v51 = vsel %vm1711_vm2, %v1703_v22, %v1672_v61  ;;  %v1614_v26 = vpop.permute.xlu2 %1613 }
 0x6b5   : > { %1720 = vst [vmem:[%s3225_s11] sm:$0xff] %v1712_v51  ;;  %v1698_v13 = vsel %vm745_vm0, %v2911_v57, %v1614_v26 }
 0x6b6   : > { %v1706_v6 = vsel %vm799_vm1, %v1698_v13, %v1646_v54 }
 0x6bb   : > { %v1612_v55 = vpop.permute.xlu0 %1611  ;;  %v1674_v32 = vpop.permute.xlu1 %1673 }
 0x6bc   : > { %v1620_v60 = vpop.permute.xlu2 %1619  ;;  %v1697_v18 = vsel %vm745_vm0, %v2905_v27, %v1612_v55 }
 0x6bd   : > { %v1705_v29 = vsel %vm799_vm1, %v1697_v18, %v1644_v49  ;;  %v1701_v57 = vsel %vm745_vm0, %v2937_v46, %v1620_v60 }
 0x6be   : > { %v1709_v44 = vsel %vm799_vm1, %v1701_v57, %v1652_v38 }
 0x6c3   : > { %v1616_v9 = vpop.permute.xlu0 %1615  ;;  %v1610_v28 = vpop.permute.xlu1 %1609 }
 0x6c4   : > { %v1676_v17 = vpop.permute.xlu2 %1675  ;;  %v1696_v31 = vsel %vm745_vm0, %v2901_v52, %v1610_v28  ;;  %v1699_v20 = vsel %vm745_vm0, %v2917_v63, %v1616_v9 }
 0x6c5   : > { %v1714_v41 = vsel %vm1711_vm2, %v1705_v29, %v1676_v17  ;;  %v1704_v1 = vsel %vm799_vm1, %v1696_v31, %v1642_v34 }
 0x6c6   : > { %1722 = vst [vmem:[%s3225_s11 + $0x10] sm:$0xff] %v1714_v41  ;;  %v1713_v5 = vsel %vm1711_vm2, %v1704_v1, %v1674_v32 }
 0x6c7   : > { %1721 = vst [vmem:[%s3225_s11 + $0x8] sm:$0xff] %v1713_v5 }
 0x6cb   : > { %v1622_v42 = vpop.permute.xlu0 %1621  ;;  %v1618_v27 = vpop.permute.xlu1 %1617 }
 0x6cc   : > { %v1700_v36 = vsel %vm745_vm0, %v2923_v7, %v1618_v27  ;;  %v1682_v56 = vpop.permute.xlu2 %1681  ;;  %v1707_v7 = vsel %vm799_vm1, %v1699_v20, %v1648_v40  ;;  %v1702_v63 = vsel %vm745_vm0, %v2948_v23, %v1622_v42 }
 0x6cd   : > { %v1708_v0 = vsel %vm799_vm1, %v1700_v36, %v1650_v12  ;;  %v1710_v47 = vsel %vm799_vm1, %v1702_v63, %v1654_v24 }
 0x6ce   : > { %v1717_v52 = vsel %vm1711_vm2, %v1708_v0, %v1682_v56 }
 0x6cf   : > { %1725 = vst [vmem:[%s3225_s11 + $0x28] sm:$0xff] %v1717_v52 }
 0x6d3   : > { %v1678_v4 = vpop.permute.xlu0 %1677  ;;  %v1680_v33 = vpop.permute.xlu1 %1679 }
 0x6d4   : > { %v1715_v35 = vsel %vm1711_vm2, %v1706_v6, %v1678_v4  ;;  %v1716_v62 = vsel %vm1711_vm2, %v1707_v7, %v1680_v33 }
 0x6d5   : > { %1723 = vst [vmem:[%s3225_s11 + $0x18] sm:$0xff] %v1715_v35 }
 0x6d6   : > { %1724 = vst [vmem:[%s3225_s11 + $0x20] sm:$0xff] %v1716_v62 }
 0x6db   : > { %v1684_v15 = vpop.permute.xlu0 %1683  ;;  %v1686_v58 = vpop.permute.xlu1 %1685 }
 0x6dc   : > { %v1718_v3 = vsel %vm1711_vm2, %v1709_v44, %v1684_v15  ;;  %v1719_v2 = vsel %vm1711_vm2, %v1710_v47, %v1686_v58 }
 0x6dd   : > { %1726 = vst [vmem:[%s3225_s11 + $0x30] sm:$0xff] %v1718_v3 }
 0x6de   : > { %1727 = vst [vmem:[%s3225_s11 + $0x38] sm:$0xff] %v1719_v2 }
 0x6df   : > { %2418 = shalt.err (!%p2415_p10)
}
 0x6e0   : > { %s2475_s15 = smov 128   ;;  %s2476_s11 = smov 8  }
 0x6e1   : > { %2070 = dma.vmem_to_hbm [thread:$0]  (%p2608_p3), %s3262_s28, 1024, %s1744_s12, %s1729_s19, %s2475_s15, %s2475_s15, %s2476_s11  }
 0x6e2 PF: > { %s1758_s20 = sand.u32 1, %s2453_s24   ;;  %p3320_p12 = scmp.ge.s32.totalorder %s2465_s27, 2 }
 0x6e3   : > { %s1759_s1 = scalar_lea.sflag [#allocation4], %s1758_s20 }
 0x6e4   : > { %p2087_p13 = pnand %p3320_p12, %p2552_p6 }
 0x6e6   : > { %p2088_p0 = pneg %p2087_p13 }
 0x6e8   : > { %2448 = dma.done.wait (%p2088_p0), %s1759_s1, 1024  }
 0x6e9   : > { %2450 = vsyncadd (%p2088_p0), %s1759_s1, 4294966272  ;;  %p22_p5 = scmp.ge.s32.totalorder %s2590_s13, 4   ;;  %s3321_s24 = smov %s2457_s25 }
 0x6ea   : > { %s3322_s25 = smov %s2461_s26  ;;  %s3323_s26 = smov %s2604_s17 }
 0x6eb   : > { %s3324_s27 = smov %s2590_s13  ;;  %24 = sbr.rel (!%p22_p5) target bundleno = 9 (0x9), region = 105 }
 0x6f0   :  { %1765 = vsyncpa [#allocation3], 1 }
 0x6f1   :  { %1767 = vsyncpa [#allocation3 + $0x1], 1 }
 0x6f2   :  { %1768 = vsyncpa [#allocation6], 1 }
 0x6f3   :  { %1769 = vsyncpa [#allocation9], 1 }
 0x6f4   :  { %1770 = vsyncpa [#allocation4], 1 }
 0x6f5   :  { %1772 = vsyncpa [#allocation4 + $0x1], 1 }

</bundles_post_ra>
